<compile_context>
chip_gen: v7x
topology: tpu7x:2x2x1
jax: 0.10.0
libtpu: 0.0.40
codegen_flags: <defaults>
</compile_context>

<pallas_src>
import functools

import jax
import jax.numpy as jnp
from jax import lax
from jax.experimental import pallas as pl
from jax.experimental.pallas import tpu as pltpu


# ----------------------------------------------------------------------------
# Fused kernel: pos-gather + proj + L x (conv3 + BN(eval) + GELU) + head + pin
# ----------------------------------------------------------------------------
def _fused_cnn_kernel(pos_ids_ref,                      # scalar prefetch (SMEM)
                      f_ref, pos_tbl_ref, w_in_ref, b_in_ref, w_conv_ref,
                      scale_ref, shift_ref, w_out_ref, b_out_ref,   # inputs
                      o_ref,                                        # output
                      x_scr, pos_scr, sem,                          # scratch
                      *, num_layers, seq_len, batch_tile, embed_dim):
    s, e, bt = seq_len, embed_dim, batch_tile
    rows = bt * s
    base = pl.program_id(0) * rows

    # 1) Positional-embedding gather: one small HBM->VMEM DMA per row; indices
    #    come from the scalar-prefetched positions array in SMEM.
    @pl.loop(0, rows)
    def _start_gather(i):
        pltpu.make_async_copy(pos_tbl_ref.at[pos_ids_ref[base + i]],
                              pos_scr.at[i], sem.at[0]).start()

    # 2) Input projection on the MXU overlaps with the gather DMAs.
    proj = jnp.dot(f_ref[...].astype(jnp.bfloat16), w_in_ref[...],
                   preferred_element_type=jnp.float32)              # (rows, E)

    # 3) Wait for all gathered rows (all copies are the same size, shared sem).
    @pl.loop(0, rows)
    def _wait_gather(i):
        pltpu.make_async_copy(pos_tbl_ref.at[0], pos_scr.at[i], sem.at[0]).wait()

    # Combine in f32, store the resident activation in bf16 (full-tile store).
    x_scr[...] = (proj + b_in_ref[...] + pos_scr[...]).astype(jnp.bfloat16)

    # Per-sample boundary masks (rows = Bt samples x S positions, no pad rows).
    row = lax.broadcasted_iota(jnp.int32, (rows, 1), 0)
    not_first = row != 0
    not_last = row != (s - 1)
    for b in range(1, bt):
        not_first = jnp.logical_and(not_first, row != b * s)
        not_last = jnp.logical_and(not_last, row != (b * s + s - 1))

    # 4) Conv blocks: one wide (rows,E)@(E,3E) MXU dot per layer against the
    #    pre-concatenated [W0|W1|W2]; the t-1 / t+1 taps are sublane rolls
    #    (XLU) masked at per-sample boundaries; conv-bias + BatchNorm(eval)
    #    folded into one per-channel affine; exact-erf GELU.
    for l in range(num_layers):
        z = jnp.dot(x_scr[...], w_conv_ref[l],
                    preferred_element_type=jnp.float32)             # (rows, 3E)
        left = pltpu.roll(z[:, 0:e], shift=1, axis=0)               # z[t-1, 0:E]
        right = pltpu.roll(z[:, 2 * e:3 * e], shift=rows - 1, axis=0)  # z[t+1]
        y = (z[:, e:2 * e]
             + jnp.where(not_first, left, 0.0)
             + jnp.where(not_last, right, 0.0))
        y = y * scale_ref[l] + shift_ref[l]
        y = 0.5 * y * (1.0 + lax.erf(y * 0.7071067811865476))       # exact GELU
        x_scr[...] = y.astype(jnp.bfloat16)
        # TODO(synk): Dropout(p=0.1) is identity in eval mode; train-mode
        # dropout / batch-statistics BatchNorm are not reproduced here.

    # 5) Output head (E -> 2 via lane-padded weights; only 2 lanes stored) and
    #    in-kernel _fix_coordinates pinning of the first/last sequence rows.
    head = jnp.dot(x_scr[...], w_out_ref[...],
                   preferred_element_type=jnp.float32) + b_out_ref[...]
    coords = head[:, 0:2]                                           # (rows, 2)
    col = lax.broadcasted_iota(jnp.int32, (rows, 2), 1)
    last_vals = jnp.where(col == 0, 600.0, 0.0)                     # [600, 0]
    coords = jnp.where(jnp.logical_not(not_first), 0.0, coords)     # [0, 0]
    coords = jnp.where(jnp.logical_not(not_last), last_vals, coords)
    o_ref[...] = coords


# ----------------------------------------------------------------------------
# Wrapper
# ----------------------------------------------------------------------------
def _pick_batch_tile(bsz, s, target_rows=256):
    """Largest divisor of bsz whose row count (bt*s) stays within target_rows."""
    best = 1
    for bt in range(1, bsz + 1):
        if bsz % bt == 0 and (bt == 1 or bt * s <= max(target_rows, s)):
            best = bt
    if best != bsz and (best * s) % 8 != 0:
        best = bsz  # keep blocks sublane-aligned (or equal to the full extent)
    return best


def _vmem_limit_bytes(bt, s, d, e, num_layers):
    """Estimate double-buffered block + scratch VMEM and add headroom."""
    rows = bt * s

    def tile(r, c, itemsize):
        return -(-r // 8) * 8 * -(-c // 128) * 128 * itemsize

    total = (2 * tile(rows, d, 4)                    # features block
             + 2 * tile(d, e, 2)                     # w_in (bf16)
             + 2 * tile(1, e, 4)                     # b_in
             + 2 * num_layers * tile(e, 3 * e, 2)    # conv weights (bf16)
             + 4 * num_layers * tile(1, e, 4)        # bn scale + shift
             + 2 * tile(e, 128, 2)                   # padded w_out (bf16)
             + 2 * tile(1, 128, 4)                   # padded b_out
             + 2 * tile(rows, 2, 4)                  # output block
             + tile(rows, e, 2)                      # resident activation bf16
             + tile(rows, e, 4))                     # gathered pos rows f32
    return int(min(max(2 * total + (4 << 20), 16 << 20), 120 << 20))


def coordinate_cnn_forward(params, features, positions, mask):
    del mask  # unused by the PyTorch forward as well
    bsz, s, d = features.shape
    e = params["w_in"].shape[1]
    num_layers = len(params["conv_layers"])

    bt = _pick_batch_tile(bsz, s)
    rows = bt * s
    grid = bsz // bt

    # Metadata-only reshapes: present lane/sublane-aligned 2-D blocks.
    features_2d = features.reshape(bsz * s, d)
    pos_flat = positions.reshape(bsz * s).astype(jnp.int32)

    # Pre-concatenate [W0|W1|W2] per layer -> (L, E, 3E); fold conv bias into
    # the BatchNorm(eval) affine: y = conv*scale + (bias*scale + shift).
    w_conv = jnp.stack(
        [jnp.concatenate([lyr["w"][0], lyr["w"][1], lyr["w"][2]], axis=1)
         for lyr in params["conv_layers"]], axis=0).astype(jnp.bfloat16)
    scale = jnp.stack([lyr["bn_scale"] for lyr in params["conv_layers"]],
                      axis=0)[:, None, :].astype(jnp.float32)        # (L,1,E)
    shift = jnp.stack([lyr["b"] * lyr["bn_scale"] + lyr["bn_shift"]
                       for lyr in params["conv_layers"]],
                      axis=0)[:, None, :].astype(jnp.float32)        # (L,1,E)

    # Lane-padded head weights (zeros outside columns 0..1); only 2 lanes of
    # the result are ever stored to HBM.
    w_out_pad = jnp.zeros((e, 128), jnp.float32).at[:, :2].set(
        params["w_out"]).astype(jnp.bfloat16)
    b_out_pad = jnp.zeros((1, 128), jnp.float32).at[0, :2].set(params["b_out"])

    kernel = functools.partial(_fused_cnn_kernel, num_layers=num_layers,
                               seq_len=s, batch_tile=bt, embed_dim=e)

    # TODO(synk): for very deep / wide configs on v7x, stream conv weights one
    # layer per grid step (inner "arbitrary" L axis) instead of holding the
    # full (L, E, 3E) stack resident.
    out2d = pl.pallas_call(
        kernel,
        out_shape=jax.ShapeDtypeStruct((bsz * s, 2), jnp.float32),
        grid_spec=pltpu.PrefetchScalarGridSpec(
            num_scalar_prefetch=1,                    # positions -> SMEM
            grid=(grid,),
            in_specs=[
                pl.BlockSpec((rows, d), lambda b, pos: (b, 0)),       # features
                pl.BlockSpec(memory_space=pl.ANY),                    # pos_table (HBM)
                pl.BlockSpec((d, e), lambda b, pos: (0, 0)),          # w_in
                pl.BlockSpec((1, e), lambda b, pos: (0, 0)),          # b_in
                pl.BlockSpec((num_layers, e, 3 * e),
                             lambda b, pos: (0, 0, 0)),               # conv W
                pl.BlockSpec((num_layers, 1, e),
                             lambda b, pos: (0, 0, 0)),               # bn scale
                pl.BlockSpec((num_layers, 1, e),
                             lambda b, pos: (0, 0, 0)),               # bias+shift
                pl.BlockSpec((e, 128), lambda b, pos: (0, 0)),        # w_out (pad)
                pl.BlockSpec((1, 128), lambda b, pos: (0, 0)),        # b_out (pad)
            ],
            out_specs=pl.BlockSpec((rows, 2), lambda b, pos: (b, 0)),
            scratch_shapes=[
                pltpu.VMEM((rows, e), jnp.bfloat16),   # resident activation
                pltpu.VMEM((rows, e), jnp.float32),    # gathered pos rows
                pltpu.SemaphoreType.DMA((1,)),
            ],
        ),
        compiler_params=pltpu.CompilerParams(
            dimension_semantics=("parallel",),
            vmem_limit_bytes=_vmem_limit_bytes(bt, s, d, e, num_layers),
        ),
    )(
        pos_flat,
        features_2d,
        params["pos_table"].astype(jnp.float32),
        params["w_in"].astype(jnp.bfloat16),
        params["b_in"].reshape(1, e).astype(jnp.float32),
        w_conv, scale, shift, w_out_pad, b_out_pad,
    )
    return out2d.reshape(bsz, s, 2)


# ----------------------------------------------------------------------------
# Pure-JAX f32 reference (correctness oracle)
# ----------------------------------------------------------------------------
def coordinate_cnn_ref(params, features, positions, mask):
    del mask
    x = features @ params["w_in"] + params["b_in"] + params["pos_table"][positions]
    for layer in params["conv_layers"]:
        xp = jnp.pad(x, ((0, 0), (1, 1), (0, 0)))
        y = (
            jnp.einsum("bse,ef->bsf", xp[:, :-2], layer["w"][0])
            + jnp.einsum("bse,ef->bsf", xp[:, 1:-1], layer["w"][1])
            + jnp.einsum("bse,ef->bsf", xp[:, 2:], layer["w"][2])
            + layer["b"]
        )
        y = y * layer["bn_scale"] + layer["bn_shift"]
        x = 0.5 * y * (1.0 + lax.erf(y * 0.7071067811865476))
    coords = x @ params["w_out"] + params["b_out"]
    coords = coords.at[:, 0, :].set(jnp.array([0.0, 0.0], jnp.float32))
    coords = coords.at[:, -1, :].set(jnp.array([600.0, 0.0], jnp.float32))
    return coords


# ----------------------------------------------------------------------------
# Deterministic parameter construction (synthetic, no checkpoint load)
# ----------------------------------------------------------------------------
def make_params(key, input_dim, embed_dim, num_layers, num_positions=600):
    keys = jax.random.split(key, 5 + 6 * num_layers)
    eps = 1e-5
    params = {
        "pos_table": 0.02 * jax.random.normal(keys[0], (num_positions, embed_dim), jnp.float32),
        "w_in": 0.05 * jax.random.normal(keys[1], (input_dim, embed_dim), jnp.float32),
        "b_in": 0.05 * jax.random.normal(keys[2], (embed_dim,), jnp.float32),
        "w_out": 0.05 * jax.random.normal(keys[3], (embed_dim, 2), jnp.float32),
        "b_out": 0.05 * jax.random.normal(keys[4], (2,), jnp.float32),
        "conv_layers": [],
    }
    for l in range(num_layers):
        k = keys[5 + 6 * l: 5 + 6 * (l + 1)]
        # PyTorch Conv1d weight is (out, in, k); store as (k, in, out) so that
        # y[t] = sum_k x[t+k-1] @ W_k in channels-last layout.
        conv_w_torch = 0.05 * jax.random.normal(k[0], (embed_dim, embed_dim, 3), jnp.float32)
        w_k = jnp.transpose(conv_w_torch, (2, 1, 0))
        bias = 0.05 * jax.random.normal(k[1], (embed_dim,), jnp.float32)
        gamma = 1.0 + 0.1 * jax.random.normal(k[2], (embed_dim,), jnp.float32)
        beta = 0.1 * jax.random.normal(k[3], (embed_dim,), jnp.float32)
        run_mean = 0.1 * jax.random.normal(k[4], (embed_dim,), jnp.float32)
        run_var = 1.0 + jnp.abs(0.1 * jax.random.normal(k[5], (embed_dim,), jnp.float32))
        scale = gamma / jnp.sqrt(run_var + eps)
        shift = beta - run_mean * scale
        params["conv_layers"].append(
            {"w": w_k, "b": bias, "bn_scale": scale, "bn_shift": shift}
        )
    return params


if __name__ == "__main__":
    # Small shapes consistent with the module's forward:
    #   features: (B, S, input_dim), positions: (B, S) int in [0, 600), mask unused.
    B, S, D_IN, E, L = 2, 8, 32, 128, 3

    key = jax.random.PRNGKey(0)
    k_par, k_feat, k_pos = jax.random.split(key, 3)
    params = make_params(k_par, input_dim=D_IN, embed_dim=E, num_layers=L)

    features = jax.random.normal(k_feat, (B, S, D_IN), jnp.float32)
    positions = jax.random.randint(k_pos, (B, S), 0, 600, dtype=jnp.int32)
    mask = jnp.ones((B, S), jnp.float32)  # unused, kept for interface parity

    out = jax.block_until_ready(coordinate_cnn_forward(params, features, positions, mask))
    ref = jax.block_until_ready(coordinate_cnn_ref(params, features, positions, mask))

    assert out.shape == (B, S, 2), out.shape
    # bf16 MXU inputs (f32 accumulation) -> loosened tolerance vs f32 reference.
    assert jnp.allclose(out, ref, atol=5e-2, rtol=5e-2), float(jnp.max(jnp.abs(out - ref)))
    print("KERNEL_OK")
</pallas_src>

<mosaic_0001>
module attributes {stable_mosaic.version = 11 : i64} {
  func.func @_fused_cnn_kernel(%arg0: i32, %arg1: memref<16xi32, #tpu.memory_space<smem>>, %arg2: memref<16x32xf32, #tpu.memory_space<vmem>>, %arg3: memref<600x128xf32, #tpu.memory_space<any>>, %arg4: memref<32x128xbf16, #tpu.memory_space<vmem>>, %arg5: memref<1x128xf32, #tpu.memory_space<vmem>>, %arg6: memref<3x128x384xbf16, #tpu.memory_space<vmem>>, %arg7: memref<3x1x128xf32, #tpu.memory_space<vmem>>, %arg8: memref<3x1x128xf32, #tpu.memory_space<vmem>>, %arg9: memref<128x128xbf16, #tpu.memory_space<vmem>>, %arg10: memref<1x128xf32, #tpu.memory_space<vmem>>, %arg11: memref<16x2xf32, #tpu.memory_space<vmem>>, %arg12: memref<16x128xbf16, #tpu.memory_space<vmem>>, %arg13: memref<16x128xf32, #tpu.memory_space<vmem>>, %arg14: memref<1x!tpu.dma_semaphore, #tpu.memory_space<semaphore_mem>>) attributes {dimension_semantics = [#tpu.dimension_semantics<parallel>], iteration_bounds = array<i64: 1>, scalar_prefetch = 1 : i64, scratch_operands = 3 : i64, tpu.core_type = #tpu.core_type<tc>, window_params = [{transform_indices = @transform_0, window_bounds = array<i64: 16, 32>}, {}, {pipeline_mode = #tpu.pipeline_mode<synchronous>, transform_indices = @transform_2, window_bounds = array<i64: 32, 128>}, {pipeline_mode = #tpu.pipeline_mode<synchronous>, transform_indices = @transform_3, window_bounds = array<i64: 1, 128>}, {pipeline_mode = #tpu.pipeline_mode<synchronous>, transform_indices = @transform_4, window_bounds = array<i64: 3, 128, 384>}, {pipeline_mode = #tpu.pipeline_mode<synchronous>, transform_indices = @transform_5, window_bounds = array<i64: 3, 1, 128>}, {pipeline_mode = #tpu.pipeline_mode<synchronous>, transform_indices = @transform_6, window_bounds = array<i64: 3, 1, 128>}, {pipeline_mode = #tpu.pipeline_mode<synchronous>, transform_indices = @transform_7, window_bounds = array<i64: 128, 128>}, {pipeline_mode = #tpu.pipeline_mode<synchronous>, transform_indices = @transform_8, window_bounds = array<i64: 1, 128>}, {transform_indices = @transform_9, window_bounds = array<i64: 16, 2>}]} {
    %c16_i32 = arith.constant 16 : i32
    %0 = arith.muli %arg0, %c16_i32 : i32
    %c0_i32 = arith.constant 0 : i32
    %c16_i32_0 = arith.constant 16 : i32
    %1 = arith.addi %c0_i32, %c16_i32_0 : i32
    %c1_i32 = arith.constant 1 : i32
    scf.for %arg15 = %c0_i32 to %1 step %c1_i32  : i32 {
      %c1_i32_92 = arith.constant 1 : i32
      %159 = arith.muli %arg15, %c1_i32_92 : i32
      %c0_i32_93 = arith.constant 0 : i32
      %160 = arith.addi %c0_i32_93, %159 : i32
      %161 = arith.addi %0, %160 : i32
      %162 = arith.index_cast %161 : i32 to index
      %163 = memref.load %arg1[%162] : memref<16xi32, #tpu.memory_space<smem>>
      %c0_i32_94 = arith.constant 0 : i32
      %c0_i32_95 = arith.constant 0 : i32
      %164 = tpu.memref_slice %arg3[%163, %c0_i32_95] : memref<600x128xf32, #tpu.memory_space<any>> -> memref<1x128xf32, #tpu.memory_space<any>>
      %165 = tpu.memref_squeeze %164 : memref<1x128xf32, #tpu.memory_space<any>> -> memref<128xf32, #tpu.memory_space<any>>
      %c0_i32_96 = arith.constant 0 : i32
      %166 = tpu.memref_slice %arg13[%160, %c0_i32_96] : memref<16x128xf32, #tpu.memory_space<vmem>> -> memref<1x128xf32, #tpu.memory_space<vmem>>
      %167 = tpu.memref_squeeze %166 : memref<1x128xf32, #tpu.memory_space<vmem>> -> memref<128xf32, #tpu.memory_space<vmem>>
      %168 = tpu.memref_slice %arg14[%c0_i32_94] : memref<1x!tpu.dma_semaphore, #tpu.memory_space<semaphore_mem>> -> memref<1x!tpu.dma_semaphore, #tpu.memory_space<semaphore_mem>>
      %169 = tpu.memref_squeeze %168 : memref<1x!tpu.dma_semaphore, #tpu.memory_space<semaphore_mem>> -> memref<!tpu.dma_semaphore, #tpu.memory_space<semaphore_mem>>
      tpu.enqueue_dma source(%165 : memref<128xf32, #tpu.memory_space<any>>) target(%167 : memref<128xf32, #tpu.memory_space<vmem>>) target_semaphore(%169 : memref<!tpu.dma_semaphore, #tpu.memory_space<semaphore_mem>>)
    }
    %c16_i32_1 = arith.constant 16 : i32
    %c0 = arith.constant 0 : index
    %c0_2 = arith.constant 0 : index
    %2 = vector.load %arg2[%c0, %c0_2] : memref<16x32xf32, #tpu.memory_space<vmem>>, vector<16x32xf32>
    %3 = arith.truncf %2 : vector<16x32xf32> to vector<16x32xbf16>
    %c0_3 = arith.constant 0 : index
    %c0_4 = arith.constant 0 : index
    %4 = vector.load %arg4[%c0_3, %c0_4] : memref<32x128xbf16, #tpu.memory_space<vmem>>, vector<32x128xbf16>
    %cst = arith.constant dense<0.000000e+00> : vector<16x128xf32>
    %5 = tpu.matmul %3, %4, %cst {dimension_numbers = #tpu.dot_dimension_numbers<[1], [0], [0], [1], [0, 0, 1, 1], [], []>} : vector<16x32xbf16>, vector<32x128xbf16>, vector<16x128xf32> -> vector<16x128xf32>
    %c0_i32_5 = arith.constant 0 : i32
    %c16_i32_6 = arith.constant 16 : i32
    %6 = arith.addi %c0_i32_5, %c16_i32_6 : i32
    %c1_i32_7 = arith.constant 1 : i32
    scf.for %arg15 = %c0_i32_5 to %6 step %c1_i32_7  : i32 {
      %c1_i32_92 = arith.constant 1 : i32
      %159 = arith.muli %arg15, %c1_i32_92 : i32
      %c0_i32_93 = arith.constant 0 : i32
      %160 = arith.addi %c0_i32_93, %159 : i32
      %c0_i32_94 = arith.constant 0 : i32
      %c0_i32_95 = arith.constant 0 : i32
      %c0_i32_96 = arith.constant 0 : i32
      %161 = tpu.memref_slice %arg3[%c0_i32_94, %c0_i32_96] : memref<600x128xf32, #tpu.memory_space<any>> -> memref<1x128xf32, #tpu.memory_space<any>>
      %162 = tpu.memref_squeeze %161 : memref<1x128xf32, #tpu.memory_space<any>> -> memref<128xf32, #tpu.memory_space<any>>
      %c0_i32_97 = arith.constant 0 : i32
      %163 = tpu.memref_slice %arg13[%160, %c0_i32_97] : memref<16x128xf32, #tpu.memory_space<vmem>> -> memref<1x128xf32, #tpu.memory_space<vmem>>
      %164 = tpu.memref_squeeze %163 : memref<1x128xf32, #tpu.memory_space<vmem>> -> memref<128xf32, #tpu.memory_space<vmem>>
      %165 = tpu.memref_slice %arg14[%c0_i32_95] : memref<1x!tpu.dma_semaphore, #tpu.memory_space<semaphore_mem>> -> memref<1x!tpu.dma_semaphore, #tpu.memory_space<semaphore_mem>>
      %166 = tpu.memref_squeeze %165 : memref<1x!tpu.dma_semaphore, #tpu.memory_space<semaphore_mem>> -> memref<!tpu.dma_semaphore, #tpu.memory_space<semaphore_mem>>
      tpu.wait_dma2 semaphore(%166 : memref<!tpu.dma_semaphore, #tpu.memory_space<semaphore_mem>>) src(%162 : memref<128xf32, #tpu.memory_space<any>>) dst(%164 : memref<128xf32, #tpu.memory_space<vmem>>)
    }
    %c16_i32_8 = arith.constant 16 : i32
    %c0_9 = arith.constant 0 : index
    %c0_10 = arith.constant 0 : index
    %7 = vector.load %arg5[%c0_9, %c0_10] : memref<1x128xf32, #tpu.memory_space<vmem>>, vector<1x128xf32>
    %8 = vector.broadcast %7 : vector<1x128xf32> to vector<16x128xf32>
    %9 = arith.addf %5, %8 : vector<16x128xf32>
    %c0_11 = arith.constant 0 : index
    %c0_12 = arith.constant 0 : index
    %10 = vector.load %arg13[%c0_11, %c0_12] : memref<16x128xf32, #tpu.memory_space<vmem>>, vector<16x128xf32>
    %11 = arith.addf %9, %10 : vector<16x128xf32>
    %12 = arith.truncf %11 : vector<16x128xf32> to vector<16x128xbf16>
    %c0_13 = arith.constant 0 : index
    %c0_14 = arith.constant 0 : index
    %13 = vector.load %arg12[%c0_13, %c0_14] : memref<16x128xbf16, #tpu.memory_space<vmem>>, vector<16x128xbf16>
    tpu.vector_store %arg12[%c0_13, %c0_14], %12 {strides = array<i32>} : memref<16x128xbf16, #tpu.memory_space<vmem>>, vector<16x128xbf16>,
    %14 = tpu.iota {dimensions = array<i32: 0>} : vector<16x1xi32>
    %c0_i32_15 = arith.constant 0 : i32
    %15 = vector.broadcast %c0_i32_15 : i32 to vector<16x1xi32>
    %16 = arith.cmpi ne, %14, %15 : vector<16x1xi32>
    %c7_i32 = arith.constant 7 : i32
    %17 = vector.broadcast %c7_i32 : i32 to vector<16x1xi32>
    %18 = arith.cmpi ne, %14, %17 : vector<16x1xi32>
    %c8_i32 = arith.constant 8 : i32
    %19 = vector.broadcast %c8_i32 : i32 to vector<16x1xi32>
    %20 = arith.cmpi ne, %14, %19 : vector<16x1xi32>
    %21 = arith.andi %16, %20 : vector<16x1xi1>
    %c15_i32 = arith.constant 15 : i32
    %22 = vector.broadcast %c15_i32 : i32 to vector<16x1xi32>
    %23 = arith.cmpi ne, %14, %22 : vector<16x1xi32>
    %24 = arith.andi %18, %23 : vector<16x1xi1>
    %c0_16 = arith.constant 0 : index
    %c0_17 = arith.constant 0 : index
    %25 = vector.load %arg12[%c0_16, %c0_17] : memref<16x128xbf16, #tpu.memory_space<vmem>>, vector<16x128xbf16>
    %c0_18 = arith.constant 0 : index
    %c0_19 = arith.constant 0 : index
    %c0_20 = arith.constant 0 : index
    %26 = vector.load %arg6[%c0_18, %c0_19, %c0_20] : memref<3x128x384xbf16, #tpu.memory_space<vmem>>, vector<1x128x384xbf16>
    %27 = vector.shape_cast %26 : vector<1x128x384xbf16> to vector<128x384xbf16>
    %cst_21 = arith.constant dense<0.000000e+00> : vector<16x384xf32>
    %28 = tpu.matmul %25, %27, %cst_21 {dimension_numbers = #tpu.dot_dimension_numbers<[1], [0], [0], [1], [0, 0, 1, 1], [], []>} : vector<16x128xbf16>, vector<128x384xbf16>, vector<16x384xf32> -> vector<16x384xf32>
    %29 = vector.extract_strided_slice %28 {offsets = [0, 0], sizes = [16, 128], strides = [1, 1]} : vector<16x384xf32> to vector<16x128xf32>
    %c1_i32_22 = arith.constant 1 : i32
    %30 = tpu.dynamic_rotate %29 by %c1_i32_22 dim 0 : vector<16x128xf32>, i32 -> vector<16x128xf32>
    %31 = vector.extract_strided_slice %28 {offsets = [0, 256], sizes = [16, 128], strides = [1, 1]} : vector<16x384xf32> to vector<16x128xf32>
    %c15_i32_23 = arith.constant 15 : i32
    %32 = tpu.dynamic_rotate %31 by %c15_i32_23 dim 0 : vector<16x128xf32>, i32 -> vector<16x128xf32>
    %33 = vector.extract_strided_slice %28 {offsets = [0, 128], sizes = [16, 128], strides = [1, 1]} : vector<16x384xf32> to vector<16x128xf32>
    %cst_24 = arith.constant 0.000000e+00 : f32
    %34 = vector.shape_cast %21 : vector<16x1xi1> to vector<16x1xi1>
    %35 = vector.broadcast %34 : vector<16x1xi1> to vector<16x128xi1>
    %36 = vector.broadcast %cst_24 : f32 to vector<16x128xf32>
    %37 = arith.select %35, %30, %36 : vector<16x128xi1>, vector<16x128xf32>
    %38 = arith.addf %33, %37 : vector<16x128xf32>
    %cst_25 = arith.constant 0.000000e+00 : f32
    %39 = vector.shape_cast %24 : vector<16x1xi1> to vector<16x1xi1>
    %40 = vector.broadcast %39 : vector<16x1xi1> to vector<16x128xi1>
    %41 = vector.broadcast %cst_25 : f32 to vector<16x128xf32>
    %42 = arith.select %40, %32, %41 : vector<16x128xi1>, vector<16x128xf32>
    %43 = arith.addf %38, %42 : vector<16x128xf32>
    %c0_26 = arith.constant 0 : index
    %c0_27 = arith.constant 0 : index
    %c0_28 = arith.constant 0 : index
    %44 = vector.load %arg7[%c0_26, %c0_27, %c0_28] : memref<3x1x128xf32, #tpu.memory_space<vmem>>, vector<1x1x128xf32>
    %45 = vector.shape_cast %44 : vector<1x1x128xf32> to vector<1x128xf32>
    %46 = vector.broadcast %45 : vector<1x128xf32> to vector<16x128xf32>
    %47 = arith.mulf %43, %46 : vector<16x128xf32>
    %c0_29 = arith.constant 0 : index
    %c0_30 = arith.constant 0 : index
    %c0_31 = arith.constant 0 : index
    %48 = vector.load %arg8[%c0_29, %c0_30, %c0_31] : memref<3x1x128xf32, #tpu.memory_space<vmem>>, vector<1x1x128xf32>
    %49 = vector.shape_cast %48 : vector<1x1x128xf32> to vector<1x128xf32>
    %50 = vector.broadcast %49 : vector<1x128xf32> to vector<16x128xf32>
    %51 = arith.addf %47, %50 : vector<16x128xf32>
    %cst_32 = arith.constant 5.000000e-01 : f32
    %52 = vector.broadcast %cst_32 : f32 to vector<16x128xf32>
    %53 = arith.mulf %52, %51 : vector<16x128xf32>
    %cst_33 = arith.constant 0.707106769 : f32
    %54 = vector.broadcast %cst_33 : f32 to vector<16x128xf32>
    %55 = arith.mulf %51, %54 : vector<16x128xf32>
    %56 = math.erf %55 : vector<16x128xf32>
    %cst_34 = arith.constant 1.000000e+00 : f32
    %57 = vector.broadcast %cst_34 : f32 to vector<16x128xf32>
    %58 = arith.addf %57, %56 : vector<16x128xf32>
    %59 = arith.mulf %53, %58 : vector<16x128xf32>
    %60 = arith.truncf %59 : vector<16x128xf32> to vector<16x128xbf16>
    %c0_35 = arith.constant 0 : index
    %c0_36 = arith.constant 0 : index
    %61 = vector.load %arg12[%c0_35, %c0_36] : memref<16x128xbf16, #tpu.memory_space<vmem>>, vector<16x128xbf16>
    tpu.vector_store %arg12[%c0_35, %c0_36], %60 {strides = array<i32>} : memref<16x128xbf16, #tpu.memory_space<vmem>>, vector<16x128xbf16>,
    %c0_37 = arith.constant 0 : index
    %c0_38 = arith.constant 0 : index
    %62 = vector.load %arg12[%c0_37, %c0_38] : memref<16x128xbf16, #tpu.memory_space<vmem>>, vector<16x128xbf16>
    %c1 = arith.constant 1 : index
    %c0_39 = arith.constant 0 : index
    %c0_40 = arith.constant 0 : index
    %63 = vector.load %arg6[%c1, %c0_39, %c0_40] : memref<3x128x384xbf16, #tpu.memory_space<vmem>>, vector<1x128x384xbf16>
    %64 = vector.shape_cast %63 : vector<1x128x384xbf16> to vector<128x384xbf16>
    %cst_41 = arith.constant dense<0.000000e+00> : vector<16x384xf32>
    %65 = tpu.matmul %62, %64, %cst_41 {dimension_numbers = #tpu.dot_dimension_numbers<[1], [0], [0], [1], [0, 0, 1, 1], [], []>} : vector<16x128xbf16>, vector<128x384xbf16>, vector<16x384xf32> -> vector<16x384xf32>
    %66 = vector.extract_strided_slice %65 {offsets = [0, 0], sizes = [16, 128], strides = [1, 1]} : vector<16x384xf32> to vector<16x128xf32>
    %c1_i32_42 = arith.constant 1 : i32
    %67 = tpu.dynamic_rotate %66 by %c1_i32_42 dim 0 : vector<16x128xf32>, i32 -> vector<16x128xf32>
    %68 = vector.extract_strided_slice %65 {offsets = [0, 256], sizes = [16, 128], strides = [1, 1]} : vector<16x384xf32> to vector<16x128xf32>
    %c15_i32_43 = arith.constant 15 : i32
    %69 = tpu.dynamic_rotate %68 by %c15_i32_43 dim 0 : vector<16x128xf32>, i32 -> vector<16x128xf32>
    %70 = vector.extract_strided_slice %65 {offsets = [0, 128], sizes = [16, 128], strides = [1, 1]} : vector<16x384xf32> to vector<16x128xf32>
    %cst_44 = arith.constant 0.000000e+00 : f32
    %71 = vector.shape_cast %21 : vector<16x1xi1> to vector<16x1xi1>
    %72 = vector.broadcast %71 : vector<16x1xi1> to vector<16x128xi1>
    %73 = vector.broadcast %cst_44 : f32 to vector<16x128xf32>
    %74 = arith.select %72, %67, %73 : vector<16x128xi1>, vector<16x128xf32>
    %75 = arith.addf %70, %74 : vector<16x128xf32>
    %cst_45 = arith.constant 0.000000e+00 : f32
    %76 = vector.shape_cast %24 : vector<16x1xi1> to vector<16x1xi1>
    %77 = vector.broadcast %76 : vector<16x1xi1> to vector<16x128xi1>
    %78 = vector.broadcast %cst_45 : f32 to vector<16x128xf32>
    %79 = arith.select %77, %69, %78 : vector<16x128xi1>, vector<16x128xf32>
    %80 = arith.addf %75, %79 : vector<16x128xf32>
    %c1_46 = arith.constant 1 : index
    %c0_47 = arith.constant 0 : index
    %c0_48 = arith.constant 0 : index
    %81 = vector.load %arg7[%c1_46, %c0_47, %c0_48] : memref<3x1x128xf32, #tpu.memory_space<vmem>>, vector<1x1x128xf32>
    %82 = vector.shape_cast %81 : vector<1x1x128xf32> to vector<1x128xf32>
    %83 = vector.broadcast %82 : vector<1x128xf32> to vector<16x128xf32>
    %84 = arith.mulf %80, %83 : vector<16x128xf32>
    %c1_49 = arith.constant 1 : index
    %c0_50 = arith.constant 0 : index
    %c0_51 = arith.constant 0 : index
    %85 = vector.load %arg8[%c1_49, %c0_50, %c0_51] : memref<3x1x128xf32, #tpu.memory_space<vmem>>, vector<1x1x128xf32>
    %86 = vector.shape_cast %85 : vector<1x1x128xf32> to vector<1x128xf32>
    %87 = vector.broadcast %86 : vector<1x128xf32> to vector<16x128xf32>
    %88 = arith.addf %84, %87 : vector<16x128xf32>
    %cst_52 = arith.constant 5.000000e-01 : f32
    %89 = vector.broadcast %cst_52 : f32 to vector<16x128xf32>
    %90 = arith.mulf %89, %88 : vector<16x128xf32>
    %cst_53 = arith.constant 0.707106769 : f32
    %91 = vector.broadcast %cst_53 : f32 to vector<16x128xf32>
    %92 = arith.mulf %88, %91 : vector<16x128xf32>
    %93 = math.erf %92 : vector<16x128xf32>
    %cst_54 = arith.constant 1.000000e+00 : f32
    %94 = vector.broadcast %cst_54 : f32 to vector<16x128xf32>
    %95 = arith.addf %94, %93 : vector<16x128xf32>
    %96 = arith.mulf %90, %95 : vector<16x128xf32>
    %97 = arith.truncf %96 : vector<16x128xf32> to vector<16x128xbf16>
    %c0_55 = arith.constant 0 : index
    %c0_56 = arith.constant 0 : index
    %98 = vector.load %arg12[%c0_55, %c0_56] : memref<16x128xbf16, #tpu.memory_space<vmem>>, vector<16x128xbf16>
    tpu.vector_store %arg12[%c0_55, %c0_56], %97 {strides = array<i32>} : memref<16x128xbf16, #tpu.memory_space<vmem>>, vector<16x128xbf16>,
    %c0_57 = arith.constant 0 : index
    %c0_58 = arith.constant 0 : index
    %99 = vector.load %arg12[%c0_57, %c0_58] : memref<16x128xbf16, #tpu.memory_space<vmem>>, vector<16x128xbf16>
    %c2 = arith.constant 2 : index
    %c0_59 = arith.constant 0 : index
    %c0_60 = arith.constant 0 : index
    %100 = vector.load %arg6[%c2, %c0_59, %c0_60] : memref<3x128x384xbf16, #tpu.memory_space<vmem>>, vector<1x128x384xbf16>
    %101 = vector.shape_cast %100 : vector<1x128x384xbf16> to vector<128x384xbf16>
    %cst_61 = arith.constant dense<0.000000e+00> : vector<16x384xf32>
    %102 = tpu.matmul %99, %101, %cst_61 {dimension_numbers = #tpu.dot_dimension_numbers<[1], [0], [0], [1], [0, 0, 1, 1], [], []>} : vector<16x128xbf16>, vector<128x384xbf16>, vector<16x384xf32> -> vector<16x384xf32>
    %103 = vector.extract_strided_slice %102 {offsets = [0, 0], sizes = [16, 128], strides = [1, 1]} : vector<16x384xf32> to vector<16x128xf32>
    %c1_i32_62 = arith.constant 1 : i32
    %104 = tpu.dynamic_rotate %103 by %c1_i32_62 dim 0 : vector<16x128xf32>, i32 -> vector<16x128xf32>
    %105 = vector.extract_strided_slice %102 {offsets = [0, 256], sizes = [16, 128], strides = [1, 1]} : vector<16x384xf32> to vector<16x128xf32>
    %c15_i32_63 = arith.constant 15 : i32
    %106 = tpu.dynamic_rotate %105 by %c15_i32_63 dim 0 : vector<16x128xf32>, i32 -> vector<16x128xf32>
    %107 = vector.extract_strided_slice %102 {offsets = [0, 128], sizes = [16, 128], strides = [1, 1]} : vector<16x384xf32> to vector<16x128xf32>
    %cst_64 = arith.constant 0.000000e+00 : f32
    %108 = vector.shape_cast %21 : vector<16x1xi1> to vector<16x1xi1>
    %109 = vector.broadcast %108 : vector<16x1xi1> to vector<16x128xi1>
    %110 = vector.broadcast %cst_64 : f32 to vector<16x128xf32>
    %111 = arith.select %109, %104, %110 : vector<16x128xi1>, vector<16x128xf32>
    %112 = arith.addf %107, %111 : vector<16x128xf32>
    %cst_65 = arith.constant 0.000000e+00 : f32
    %113 = vector.shape_cast %24 : vector<16x1xi1> to vector<16x1xi1>
    %114 = vector.broadcast %113 : vector<16x1xi1> to vector<16x128xi1>
    %115 = vector.broadcast %cst_65 : f32 to vector<16x128xf32>
    %116 = arith.select %114, %106, %115 : vector<16x128xi1>, vector<16x128xf32>
    %117 = arith.addf %112, %116 : vector<16x128xf32>
    %c2_66 = arith.constant 2 : index
    %c0_67 = arith.constant 0 : index
    %c0_68 = arith.constant 0 : index
    %118 = vector.load %arg7[%c2_66, %c0_67, %c0_68] : memref<3x1x128xf32, #tpu.memory_space<vmem>>, vector<1x1x128xf32>
    %119 = vector.shape_cast %118 : vector<1x1x128xf32> to vector<1x128xf32>
    %120 = vector.broadcast %119 : vector<1x128xf32> to vector<16x128xf32>
    %121 = arith.mulf %117, %120 : vector<16x128xf32>
    %c2_69 = arith.constant 2 : index
    %c0_70 = arith.constant 0 : index
    %c0_71 = arith.constant 0 : index
    %122 = vector.load %arg8[%c2_69, %c0_70, %c0_71] : memref<3x1x128xf32, #tpu.memory_space<vmem>>, vector<1x1x128xf32>
    %123 = vector.shape_cast %122 : vector<1x1x128xf32> to vector<1x128xf32>
    %124 = vector.broadcast %123 : vector<1x128xf32> to vector<16x128xf32>
    %125 = arith.addf %121, %124 : vector<16x128xf32>
    %cst_72 = arith.constant 5.000000e-01 : f32
    %126 = vector.broadcast %cst_72 : f32 to vector<16x128xf32>
    %127 = arith.mulf %126, %125 : vector<16x128xf32>
    %cst_73 = arith.constant 0.707106769 : f32
    %128 = vector.broadcast %cst_73 : f32 to vector<16x128xf32>
    %129 = arith.mulf %125, %128 : vector<16x128xf32>
    %130 = math.erf %129 : vector<16x128xf32>
    %cst_74 = arith.constant 1.000000e+00 : f32
    %131 = vector.broadcast %cst_74 : f32 to vector<16x128xf32>
    %132 = arith.addf %131, %130 : vector<16x128xf32>
    %133 = arith.mulf %127, %132 : vector<16x128xf32>
    %134 = arith.truncf %133 : vector<16x128xf32> to vector<16x128xbf16>
    %c0_75 = arith.constant 0 : index
    %c0_76 = arith.constant 0 : index
    %135 = vector.load %arg12[%c0_75, %c0_76] : memref<16x128xbf16, #tpu.memory_space<vmem>>, vector<16x128xbf16>
    tpu.vector_store %arg12[%c0_75, %c0_76], %134 {strides = array<i32>} : memref<16x128xbf16, #tpu.memory_space<vmem>>, vector<16x128xbf16>,
    %c0_77 = arith.constant 0 : index
    %c0_78 = arith.constant 0 : index
    %136 = vector.load %arg12[%c0_77, %c0_78] : memref<16x128xbf16, #tpu.memory_space<vmem>>, vector<16x128xbf16>
    %c0_79 = arith.constant 0 : index
    %c0_80 = arith.constant 0 : index
    %137 = vector.load %arg9[%c0_79, %c0_80] : memref<128x128xbf16, #tpu.memory_space<vmem>>, vector<128x128xbf16>
    %cst_81 = arith.constant dense<0.000000e+00> : vector<16x128xf32>
    %138 = tpu.matmul %136, %137, %cst_81 {dimension_numbers = #tpu.dot_dimension_numbers<[1], [0], [0], [1], [0, 0, 1, 1], [], []>} : vector<16x128xbf16>, vector<128x128xbf16>, vector<16x128xf32> -> vector<16x128xf32>
    %c0_82 = arith.constant 0 : index
    %c0_83 = arith.constant 0 : index
    %139 = vector.load %arg10[%c0_82, %c0_83] : memref<1x128xf32, #tpu.memory_space<vmem>>, vector<1x128xf32>
    %140 = vector.broadcast %139 : vector<1x128xf32> to vector<16x128xf32>
    %141 = arith.addf %138, %140 : vector<16x128xf32>
    %142 = vector.extract_strided_slice %141 {offsets = [0, 0], sizes = [16, 2], strides = [1, 1]} : vector<16x128xf32> to vector<16x2xf32>
    %143 = tpu.iota {dimensions = array<i32: 1>} : vector<16x2xi32>
    %c0_i32_84 = arith.constant 0 : i32
    %144 = vector.broadcast %c0_i32_84 : i32 to vector<16x2xi32>
    %145 = arith.cmpi eq, %143, %144 : vector<16x2xi32>
    %cst_85 = arith.constant 6.000000e+02 : f32
    %cst_86 = arith.constant 0.000000e+00 : f32
    %146 = vector.broadcast %cst_85 : f32 to vector<16x2xf32>
    %147 = vector.broadcast %cst_86 : f32 to vector<16x2xf32>
    %148 = arith.select %145, %146, %147 : vector<16x2xi1>, vector<16x2xf32>
    %cst_87 = arith.constant dense<true> : vector<16x1xi1>
    %149 = arith.xori %21, %cst_87 : vector<16x1xi1>
    %cst_88 = arith.constant 0.000000e+00 : f32
    %150 = vector.shape_cast %149 : vector<16x1xi1> to vector<16x1xi1>
    %151 = vector.broadcast %150 : vector<16x1xi1> to vector<16x2xi1>
    %152 = vector.broadcast %cst_88 : f32 to vector<16x2xf32>
    %153 = arith.select %151, %152, %142 : vector<16x2xi1>, vector<16x2xf32>
    %cst_89 = arith.constant dense<true> : vector<16x1xi1>
    %154 = arith.xori %24, %cst_89 : vector<16x1xi1>
    %155 = vector.shape_cast %154 : vector<16x1xi1> to vector<16x1xi1>
    %156 = vector.broadcast %155 : vector<16x1xi1> to vector<16x2xi1>
    %157 = arith.select %156, %148, %153 : vector<16x2xi1>, vector<16x2xf32>
    %c0_90 = arith.constant 0 : index
    %c0_91 = arith.constant 0 : index
    %158 = vector.load %arg11[%c0_90, %c0_91] : memref<16x2xf32, #tpu.memory_space<vmem>>, vector<16x2xf32>
    tpu.vector_store %arg11[%c0_90, %c0_91], %157 {strides = array<i32>} : memref<16x2xf32, #tpu.memory_space<vmem>>, vector<16x2xf32>,
    return
  }
  func.func @transform_0(%arg0: i32, %arg1: memref<16xi32, #tpu.memory_space<smem>>) -> (i32, i32) {
    %c0_i32 = arith.constant 0 : i32
    %c0_i32_0 = arith.constant 0 : i32
    return %arg0, %c0_i32 : i32, i32
  }
  func.func @transform_2(%arg0: i32, %arg1: memref<16xi32, #tpu.memory_space<smem>>) -> (i32, i32) {
    %c0_i32 = arith.constant 0 : i32
    %c0_i32_0 = arith.constant 0 : i32
    %c0_i32_1 = arith.constant 0 : i32
    return %c0_i32, %c0_i32_0 : i32, i32
  }
  func.func @transform_3(%arg0: i32, %arg1: memref<16xi32, #tpu.memory_space<smem>>) -> (i32, i32) {
    %c0_i32 = arith.constant 0 : i32
    %c0_i32_0 = arith.constant 0 : i32
    %c0_i32_1 = arith.constant 0 : i32
    return %c0_i32, %c0_i32_0 : i32, i32
  }
  func.func @transform_4(%arg0: i32, %arg1: memref<16xi32, #tpu.memory_space<smem>>) -> (i32, i32, i32) {
    %c0_i32 = arith.constant 0 : i32
    %c0_i32_0 = arith.constant 0 : i32
    %c0_i32_1 = arith.constant 0 : i32
    %c0_i32_2 = arith.constant 0 : i32
    return %c0_i32, %c0_i32_0, %c0_i32_1 : i32, i32, i32
  }
  func.func @transform_5(%arg0: i32, %arg1: memref<16xi32, #tpu.memory_space<smem>>) -> (i32, i32, i32) {
    %c0_i32 = arith.constant 0 : i32
    %c0_i32_0 = arith.constant 0 : i32
    %c0_i32_1 = arith.constant 0 : i32
    %c0_i32_2 = arith.constant 0 : i32
    return %c0_i32, %c0_i32_0, %c0_i32_1 : i32, i32, i32
  }
  func.func @transform_6(%arg0: i32, %arg1: memref<16xi32, #tpu.memory_space<smem>>) -> (i32, i32, i32) {
    %c0_i32 = arith.constant 0 : i32
    %c0_i32_0 = arith.constant 0 : i32
    %c0_i32_1 = arith.constant 0 : i32
    %c0_i32_2 = arith.constant 0 : i32
    return %c0_i32, %c0_i32_0, %c0_i32_1 : i32, i32, i32
  }
  func.func @transform_7(%arg0: i32, %arg1: memref<16xi32, #tpu.memory_space<smem>>) -> (i32, i32) {
    %c0_i32 = arith.constant 0 : i32
    %c0_i32_0 = arith.constant 0 : i32
    %c0_i32_1 = arith.constant 0 : i32
    return %c0_i32, %c0_i32_0 : i32, i32
  }
  func.func @transform_8(%arg0: i32, %arg1: memref<16xi32, #tpu.memory_space<smem>>) -> (i32, i32) {
    %c0_i32 = arith.constant 0 : i32
    %c0_i32_0 = arith.constant 0 : i32
    %c0_i32_1 = arith.constant 0 : i32
    return %c0_i32, %c0_i32_0 : i32, i32
  }
  func.func @transform_9(%arg0: i32, %arg1: memref<16xi32, #tpu.memory_space<smem>>) -> (i32, i32) {
    %c0_i32 = arith.constant 0 : i32
    %c0_i32_0 = arith.constant 0 : i32
    return %arg0, %c0_i32 : i32, i32
  }
}

</mosaic_0001>

<bundles_post_ra>
// kernel: tpu_custom_call.1
= control target key start
LH: loop header
LB: loop body
LE: loop exit
PB: predicated region body
PF: predicated region fallthrough
CT: control target
= control target key end

     0   :  { %s2087_s0 = inlined_call_operand.hbm [shape: s32[16], index: 0, kind: input, shape index: {}]   ;;  %s2088_s1 = inlined_call_operand.hbm [shape: f32[16,32], index: 1, kind: input, shape index: {}]   ;;  %s2089_s2 = inlined_call_operand.hbm [shape: f32[600,128], index: 2, kind: input, shape index: {}]   ;;  %s2090_s3 = inlined_call_operand.hbm [shape: bf16[32,128], index: 3, kind: input, shape index: {}]   ;;  %s2091_s4 = inlined_call_operand.vmem [shape: f32[1,128], index: 4, kind: input, shape index: {}]   ;;  %s2092_s5 = inlined_call_operand.hbm [shape: bf16[3,128,384], index: 5, kind: input, shape index: {}]   ;;  %s2093_s6 = inlined_call_operand.vmem [shape: f32[3,1,128], index: 6, kind: input, shape index: {}]   ;;  %s2094_s7 = inlined_call_operand.vmem [shape: f32[3,1,128], index: 7, kind: input, shape index: {}]   ;;  %s2095_s8 = inlined_call_operand.hbm [shape: bf16[128,128], index: 8, kind: input, shape index: {}]   ;;  %s2096_s9 = inlined_call_operand.vmem [shape: f32[1,128], index: 9, kind: input, shape index: {}]   ;;  %s2097_s10 = inlined_call_operand.vmem [shape: f32[16,2], index: 10, kind: output, shape index: {}]  }
   0x1   :  { %s1636_s15 = scalar_lea.hbm %s2087_s0, 16 }
   0x2   :  { %p1637_p0 = scmp.ne.s32.totalorder %s2087_s0, %s1636_s15  ;;  %p1640_p1 = scmp.lt.u32.totalorder %s1636_s15, %s2087_s0 }
   0x4   :  { %p1642_p2 = pnand %p1640_p1, %p1637_p0 }
   0x6   :  { %1645 = shalt.err (!%p1642_p2)  }
   0x7   :  { %s1784_s20 = smov [#allocation6]  }
   0x8   :  { %16 = dma.hbm_to_smem %s2087_s0, 16, %s1784_s20, [#allocation5] }
   0x9   :  { %1766 = dma.done.wait [#allocation5], 16 }
   0xa   :  { %1767 = vsyncadd [#allocation5], 4294967280 }
   0xb   :  { %18 = sfence }
   0xc   :  { %19 = vsyncpa [#allocation8], 0 }
   0xd   :  { %20 = vsyncpa [#allocation10], 0 }
   0xe   :  { %21 = vsyncpa [#allocation13], 0  ;;  %s1785_s23 = smov [#allocation9]   ;;  %s1646_s27 = scalar_lea.hbm %s2090_s3, 256 }
   0xf   :  { %s39_s24 = sshll.u32 %s1785_s23, 4  ;;  %p1647_p3 = scmp.ne.s32.totalorder %s2090_s3, %s1646_s27  ;;  %s40_s24 = int_to_ptr.vmem [resolvable:$true] %s39_s24 }
  0x10   :  { %p1650_p4 = scmp.lt.u32.totalorder %s1646_s27, %s2090_s3 }
  0x12   :  { %p1652_p5 = pnand %p1650_p4, %p1647_p3 }
  0x14   :  { %1655 = shalt.err (!%p1652_p5)
}
  0x15   :  { %s1656_s0 = scalar_lea.vmem %s40_s24, 256  ;;  %p1661_p7 = scmp.lt.s32.totalorder %s40_s24, %s40_s24 }
  0x16   :  { %p1657_p6 = scmp.ne.s32.totalorder %s40_s24, %s1656_s0  ;;  %p1662_p8 = scmp.lt.s32.totalorder %s1656_s0, %s1656_s0 }
  0x18   :  { %p1663_p9 = por %p1662_p8, %p1661_p7 }
  0x1a   :  { %p1664_p10 = pnand %p1663_p9, %p1657_p6 }
  0x1c   :  { %1667 = shalt.err (!%p1664_p10)
}
  0x1d   :  { %s1786_s12 = smov 64   ;;  %s1787_s13 = smov 4  }
  0x1e   :  { %45 = dma.hbm_to_vmem [thread:$0]  %s2090_s3, 256, %s40_s24, [#allocation10], %s1786_s12, %s1786_s12, %s1787_s13  }
  0x1f   :  { %s1788_s16 = smov [#allocation7]   ;;  %s1668_s20 = scalar_lea.hbm %s2088_s1, 256 }
  0x20   :  { %s27_s17 = sshll.u32 %s1788_s16, 4  ;;  %p1669_p11 = scmp.ne.s32.totalorder %s2088_s1, %s1668_s20  ;;  %s28_s17 = int_to_ptr.vmem [resolvable:$true] %s27_s17 }
  0x21   :  { %p1672_p12 = scmp.lt.u32.totalorder %s1668_s20, %s2088_s1 }
  0x23   :  { %p1674_p13 = pnand %p1672_p12, %p1669_p11 }
  0x25   :  { %1677 = shalt.err (!%p1674_p13)
}
  0x26   :  { %s1678_s26 = scalar_lea.vmem %s28_s17, 256  ;;  %p1683_p1 = scmp.lt.s32.totalorder %s28_s17, %s28_s17 }
  0x27   :  { %p1679_p0 = scmp.ne.s32.totalorder %s28_s17, %s1678_s26  ;;  %p1684_p2 = scmp.lt.s32.totalorder %s1678_s26, %s1678_s26 }
  0x29   :  { %p1685_p3 = por %p1684_p2, %p1683_p1 }
  0x2b   :  { %p1686_p4 = pnand %p1685_p3, %p1679_p0 }
  0x2d   :  { %1689 = shalt.err (!%p1686_p4)
}
  0x2e   :  { %s1789_s3 = smov 128   ;;  %s1790_s24 = smov 8  }
  0x2f   :  { %33 = dma.hbm_to_vmem [thread:$0]  %s2088_s1, 256, %s28_s17, [#allocation8], %s1789_s3, %s1789_s3, %s1790_s24  }
  0x30   :  { %s1791_s29 = smov [#allocation11]   ;;  %s1690_s14 = scalar_lea.hbm %s2092_s5, 9216 }
  0x31   :  { %s53_s30 = sshll.u32 %s1791_s29, 4  ;;  %p1691_p5 = scmp.ne.s32.totalorder %s2092_s5, %s1690_s14  ;;  %s54_s30 = int_to_ptr.vmem [resolvable:$true] %s53_s30 }
  0x32   :  { %p1694_p6 = scmp.lt.u32.totalorder %s1690_s14, %s2092_s5 }
  0x34   :  { %p1696_p7 = pnand %p1694_p6, %p1691_p5 }
  0x36   :  { %1699 = shalt.err (!%p1696_p7)
}
  0x37   :  { %s1700_s20 = scalar_lea.vmem %s54_s30, 9216  ;;  %p1705_p9 = scmp.lt.s32.totalorder %s54_s30, %s54_s30 }
  0x38   :  { %p1701_p8 = scmp.ne.s32.totalorder %s54_s30, %s1700_s20  ;;  %p1706_p10 = scmp.lt.s32.totalorder %s1700_s20, %s1700_s20 }
  0x3a   :  { %p1707_p11 = por %p1706_p10, %p1705_p9 }
  0x3c   :  { %p1708_p12 = pnand %p1707_p11, %p1701_p8 }
  0x3e   :  { %1711 = shalt.err (!%p1708_p12)
}
  0x3f   :  { %s1792_s1 = smov 192   ;;  %s1793_s17 = smov 12  }
  0x40   :  { %59 = dma.hbm_to_vmem [thread:$0]  %s2092_s5, 9216, %s54_s30, [#allocation10], %s1792_s1, %s1792_s1, %s1793_s17  }
  0x41   :  { %s1794_s23 = smov [#allocation12]   ;;  %s1712_s24 = scalar_lea.hbm %s2095_s8, 1024 }
  0x42   :  { %s69_s25 = sshll.u32 %s1794_s23, 4  ;;  %p1713_p13 = scmp.ne.s32.totalorder %s2095_s8, %s1712_s24  ;;  %s70_s25 = int_to_ptr.vmem [resolvable:$true] %s69_s25 }
  0x43   :  { %p1716_p0 = scmp.lt.u32.totalorder %s1712_s24, %s2095_s8 }
  0x45   :  { %p1718_p1 = pnand %p1716_p0, %p1713_p13 }
  0x47   :  { %1721 = shalt.err (!%p1718_p1)
}
  0x48   :  { %s1722_s0 = scalar_lea.vmem %s70_s25, 1024  ;;  %p1727_p3 = scmp.lt.s32.totalorder %s70_s25, %s70_s25 }
  0x49   :  { %p1723_p2 = scmp.ne.s32.totalorder %s70_s25, %s1722_s0  ;;  %p1728_p4 = scmp.lt.s32.totalorder %s1722_s0, %s1722_s0 }
  0x4b   :  { %p1729_p5 = por %p1728_p4, %p1727_p3 }
  0x4d   :  { %p1730_p6 = pnand %p1729_p5, %p1723_p2 }
  0x4f   :  { %1733 = shalt.err (!%p1730_p6)
}
  0x50   :  { %75 = dma.hbm_to_vmem [thread:$0]  %s2095_s8, 1024, %s70_s25, [#allocation13], %s1786_s12, %s1786_s12, %s1787_s13  }
  0x51   :  { %1768 = dma.done.wait [#allocation8], 256  }
  0x52   :  { %1769 = vsyncadd [#allocation8], 4294967040 }
  0x53   :  { %1770 = dma.done.wait [#allocation10], 9472  }
  0x54   :  { %1771 = vsyncadd [#allocation10], 4294957824 }
  0x55   :  { %1772 = dma.done.wait [#allocation13], 1024  }
  0x56   :  { %1773 = vsyncadd [#allocation13], 4294966272  ;;  %s1921_s14 = smov 0  }
  0x57 LB: > { %s99_s15 = sld [smem:[#allocation6 + %s1778_s14]]  ;;  %s102_s16 = scalar_lea.vmem [#allocation3], %s1778_s14  ;;  %s1778_s14 = sphi %s1921_s14, %s97_s14  }
  0x58   : > { %s110_s18 = sshll.u32 %s102_s16, 4  ;;  %s1736_s21 = scalar_lea.hbm %s2089_s2, 9600  ;;  %s111_s18 = int_to_ptr.vmem [resolvable:$true] %s110_s18 }
  0x5d   : > { %s1265_s8 = sshll.u32 %s99_s15, 4 }
  0x5e   : > { %s101_s19 = scalar_lea.hbm %s2089_s2, %s1265_s8 }
  0x5f   : > { %s1734_s20 = scalar_lea.hbm %s101_s19, 16  ;;  %p1737_p8 = scmp.lt.u32.totalorder %s101_s19, %s2089_s2 }
  0x60   : > { %p1735_p7 = scmp.ne.s32.totalorder %s101_s19, %s1734_s20  ;;  %p1738_p9 = scmp.lt.u32.totalorder %s1736_s21, %s1734_s20 }
  0x61   : > { %p1740_p11 = scmp.lt.u32.totalorder %s1734_s20, %s101_s19 }
  0x62   : > { %p1739_p10 = por %p1738_p9, %p1737_p8 }
  0x64   : > { %p1741_p12 = por %p1740_p11, %p1739_p10 }
  0x66   : > { %p1742_p13 = pnand %p1741_p12, %p1735_p7 }
  0x68   : > { %1745 = shalt.err (!%p1742_p13)  }
  0x69   : > { %s1746_s25 = scalar_lea.vmem %s111_s18, 16  ;;  %s1795_s26 = smov [#allocation3]  }
  0x6a   : > { %p1747_p0 = scmp.ne.s32.totalorder %s111_s18, %s1746_s25  ;;  %s1748_s3 = sshll.u32 %s1795_s26, 4  ;;  %s1749_s3 = int_to_ptr.vmem [resolvable:$false] %s1748_s3 }
  0x6b   : > { %s1750_s24 = scalar_lea.vmem %s1749_s3, 256  ;;  %p1751_p1 = scmp.lt.s32.totalorder %s111_s18, %s1749_s3 }
  0x6c   : > { %p1752_p2 = scmp.lt.s32.totalorder %s1750_s24, %s1746_s25 }
  0x6e   : > { %p1753_p3 = por %p1752_p2, %p1751_p1 }
  0x70   : > { %p1754_p4 = pnand %p1753_p3, %p1747_p0 }
  0x72   : > { %1757 = shalt.err (!%p1754_p4)  }
  0x73   : > { %113 = dma.hbm_to_vmem [thread:$0]  %s101_s19, 16, %s111_s18, [#allocation4] }
  0x74   : > { %s97_s14 = sadd.s32 1, %s1778_s14  }
  0x75   : > { %p94_p5 = scmp.ge.s32.totalorder %s97_s14, 16  }
  0x76   :  { %v114_v0 = vld [vmem:[#allocation7] sm:$0xff] (%p94_p5)  ;;  %v115_v1 = vld [vmem:[#allocation7 + $0x8] sm:$0xff] (%p94_p5)  ;;  %v117_v2 = vld [vmem:[#allocation9] sm:$0xf] (%p94_p5)  ;;  %s1780_s27 = smov (%p94_p5), 0  }
  0x77   :  { %96 = sbr.rel (!%p94_p5) target bundleno = 87 (0x57), region = 94  ;;  %v116_v3 = vpack.c.bf16 (%p94_p5), %v115_v1, %v114_v0  ;;  %v118_v4 = vld [vmem:[#allocation9 + $0x4] sm:$0xf] (%p94_p5)  ;;  %v119_v5 = vld [vmem:[#allocation9 + $0x8] sm:$0xf] (%p94_p5) }
  0x78   :  { %v120_v6 = vld [vmem:[#allocation9 + $0xc] sm:$0xf] (%p94_p5) }
  0x7e LB: > { %1774 = dma.done.wait [#allocation4], 16  ;;  %s1782_s27 = sphi %s1780_s27, %s126_s27  }
  0x7f   : > { %1775 = vsyncadd [#allocation4], 4294967280  ;;  %s126_s27 = sadd.s32 1, %s1782_s27  }
  0x80   : > { %p123_p6 = scmp.ge.s32.totalorder %s126_s27, 16  }
  0x81   :  { %v1267_v7 = vcombine.low (%p123_p6), %v117_v2, %v118_v4  ;;  %v1520_v8 = vld [vmem:[#allocation11 + $0x4] ss:$12 sps:$4 sm:$0xff] (%p123_p6)   ;;  %v1796_v9 = vmov (%p123_p6), 0.0   ;;  %vm1797_vm0 = vmmov (%p123_p6), 0   ;;  %v1522_v10 = vld [vmem:[#allocation11] ss:$12 sps:$4 sm:$0xff] (%p123_p6)   ;;  %v1268_v11 = vcombine.low (%p123_p6), %v119_v5, %v120_v6 }
  0x82   :  { %125 = sbr.rel (!%p123_p6) target bundleno = 126 (0x7e), region = 105  ;;  %1401 = vmatprep.subr.bf16.mxu0 (%p123_p6), %v1796_v9  ;;  %1405 = vmatprep.mubr.msk.bf16.mxu0 (%p123_p6), %vm1797_vm0, %v1796_v9  ;;  %v1524_v12 = vld [vmem:[#allocation11 + $0x1c] ss:$12 sps:$4 sm:$0xff] (%p123_p6)   ;;  %v1526_v13 = vld [vmem:[#allocation11 + $0x18] ss:$12 sps:$4 sm:$0xff] (%p123_p6)   ;;  %vm148_vm1 = vcmask (%p123_p6), 261120  }
  0x83   :  { %1402 = vmatpush3.bf16.msra.mxu0 (%p123_p6), %v1267_v7  ;;  %375 = vmatprep.subr.bf16.mxu1 (%p123_p6), %v1520_v8  ;;  %v1528_v14 = vld [vmem:[#allocation11 + $0x34] ss:$12 sps:$4 sm:$0xff] (%p123_p6)   ;;  %v1530_v16 = vld [vmem:[#allocation11 + $0x30] ss:$12 sps:$4 sm:$0xff] (%p123_p6)   ;;  %v1532_v17 = vld [vmem:[#allocation11 + $0x4c] ss:$12 sps:$4 sm:$0xff] (%p123_p6)   ;;  %v199_v7 = vlaneseq (%p123_p6) }
  0x84   :  { %1403 = vmatprep.subr.bf16.mxu0 (%p123_p6), %v1796_v9  ;;  %376 = vmatpush1.bf16.msra.mxu1 (%p123_p6), %v1522_v10  ;;  %v1523_v15 = vld [vmem:[#allocation11 + $0x8] ss:$12 sps:$4 sm:$0xff] (%p123_p6)   ;;  %v1527_v18 = vld [vmem:[#allocation11 + $0x20] ss:$12 sps:$4 sm:$0xff] (%p123_p6)   ;;  %v1531_v20 = vld [vmem:[#allocation11 + $0x38] ss:$12 sps:$4 sm:$0xff] (%p123_p6)  }
  0x85   :  { %377 = vmatprep.subr.bf16.mxu1 (%p123_p6), %v1524_v12  ;;  %v1534_v19 = vld [vmem:[#allocation11 + $0x48] ss:$12 sps:$4 sm:$0xff] (%p123_p6)   ;;  %v1536_v21 = vld [vmem:[#allocation11 + $0x64] ss:$12 sps:$4 sm:$0xff] (%p123_p6)   ;;  %v1538_v22 = vld [vmem:[#allocation11 + $0x60] ss:$12 sps:$4 sm:$0xff] (%p123_p6)  }
  0x86   :  { %v1540_v23 = vld [vmem:[#allocation11 + $0x7c] ss:$12 sps:$4 sm:$0xff] (%p123_p6)   ;;  %v1542_v25 = vld [vmem:[#allocation11 + $0x78] ss:$12 sps:$4 sm:$0xff] (%p123_p6)   ;;  %v1543_v27 = vld [vmem:[#allocation11 + $0x80] ss:$12 sps:$4 sm:$0xff] (%p123_p6)  }
  0x87   :  { %1404 = vmatpush3.bf16.msra.mxu0 (%p123_p6), %v1268_v11  ;;  %v1535_v24 = vld [vmem:[#allocation11 + $0x50] ss:$12 sps:$4 sm:$0xff] (%p123_p6)   ;;  %v1539_v26 = vld [vmem:[#allocation11 + $0x68] ss:$12 sps:$4 sm:$0xff] (%p123_p6)   ;;  %v1547_v30 = vld [vmem:[#allocation11 + $0x98] ss:$12 sps:$4 sm:$0xff] (%p123_p6)  }
  0x88   :  { %1409 = vmatprep.subr.bf16.mxu0 (%p123_p6), %v1796_v9  ;;  %378 = vmatpush1.bf16.msra.mxu1 (%p123_p6), %v1526_v13  ;;  %v1544_v28 = vld [vmem:[#allocation11 + $0x94] ss:$12 sps:$4 sm:$0xff] (%p123_p6)   ;;  %v1546_v29 = vld [vmem:[#allocation11 + $0x90] ss:$12 sps:$4 sm:$0xff] (%p123_p6)   ;;  %v1548_v31 = vld [vmem:[#allocation11 + $0xac] ss:$12 sps:$4 sm:$0xff] (%p123_p6)  }
  0x89   :  { %379 = vmatprep.subr.bf16.mxu1 %v1528_v14  ;;  %v1550_v32 = vld [vmem:[#allocation11 + $0xa8] ss:$12 sps:$4 sm:$0xff]   ;;  %v1551_v33 = vld [vmem:[#allocation11 + $0xb0] ss:$12 sps:$4 sm:$0xff]   ;;  %v1798_v34 = vmov 0   ;;  %v1971_v8 = vshrl.u32 %v199_v7, 7 }
  0x8a   :  { %1406 = vmatmul.mubr.msk.bf16.vlgmr.msra.gmra.mrb[0].mxu0 %vm148_vm1, %v116_v3  ;;  %407 = vmatprep.mubr.bf16.mxu1 %v1798_v34  ;;  %v1266_v35 = vld [vmem:[%s2091_s4] ss:$0 sm:$0xff]  ;;  %v194_v41 = vld [vmem:[#allocation3 + $0x8] sm:$0xff]  ;;  %v1552_v48 = vld [vmem:[#allocation11 + $0xc0] ss:$12 sps:$4 sm:$0xff]   ;;  %vm1799_vm9 = vmmov 1  }
  0x8b   :  { %1410 = vmatpush3.bf16.msra.mxu0 %v1523_v15  ;;  %1425 = vmatprep.mubr.msk.bf16.mxu0 %vm1797_vm0, %v1796_v9  ;;  %v193_v39 = vld [vmem:[#allocation3] sm:$0xff]  ;;  %v1558_v50 = vld [vmem:[#allocation11 + $0xdc] ss:$12 sps:$4 sm:$0xff]   ;;  %v1556_v51 = vld [vmem:[#allocation11 + $0xd8] ss:$12 sps:$4 sm:$0xff]   ;;  %v1974_v10 = vadd.s32 8, %v1971_v8 }
  0x8c   :  { %1411 = vmatprep.subr.bf16.mxu0 %v1796_v9  ;;  %380 = vmatpush1.bf16.msra.mxu1 %v1530_v16  ;;  %v1554_v47 = vld [vmem:[#allocation11 + $0xc4] ss:$12 sps:$4 sm:$0xff]   ;;  %v1555_v49 = vld [vmem:[#allocation11 + $0xc8] ss:$12 sps:$4 sm:$0xff]   ;;  %v1559_v52 = vld [vmem:[#allocation11 + $0xe0] ss:$12 sps:$4 sm:$0xff]  }
  0x8d   :  { %381 = vmatprep.subr.bf16.mxu1 %v1532_v17  ;;  %v1562_v53 = vld [vmem:[#allocation11 + $0xf4] ss:$12 sps:$4 sm:$0xff]   ;;  %v1560_v54 = vld [vmem:[#allocation11 + $0xf0] ss:$12 sps:$4 sm:$0xff]   ;;  %v1563_v55 = vld [vmem:[#allocation11 + $0xf8] ss:$12 sps:$4 sm:$0xff]  }
  0x8e   :  { %v1566_v56 = vld [vmem:[#allocation11 + $0x10c] ss:$12 sps:$4 sm:$0xff]   ;;  %v1564_v57 = vld [vmem:[#allocation11 + $0x108] ss:$12 sps:$4 sm:$0xff]   ;;  %v1567_v58 = vld [vmem:[#allocation11 + $0x110] ss:$12 sps:$4 sm:$0xff]  }
  0x8f   :  { %1412 = vmatpush3.bf16.msra.mxu0 %v1527_v18  ;;  %v1570_v59 = vld [vmem:[#allocation11 + $0x124] ss:$12 sps:$4 sm:$0xff]   ;;  %v1568_v60 = vld [vmem:[#allocation11 + $0x120] ss:$12 sps:$4 sm:$0xff]   ;;  %v1571_v61 = vld [vmem:[#allocation11 + $0x128] ss:$12 sps:$4 sm:$0xff]  }
  0x90   :  { %1413 = vmatprep.subr.bf16.mxu0 %v1796_v9  ;;  %382 = vmatpush1.bf16.msra.mxu1 %v1534_v19  ;;  %v1574_v62 = vld [vmem:[#allocation11 + $0x13c] ss:$12 sps:$4 sm:$0xff]   ;;  %v1572_v63 = vld [vmem:[#allocation11 + $0x138] ss:$12 sps:$4 sm:$0xff]   ;;  %v1575_v0 = vld [vmem:[#allocation11 + $0x140] ss:$12 sps:$4 sm:$0xff]  }
  0x91   :  { %383 = vmatprep.subr.bf16.mxu1 %v1536_v21  ;;  %v1578_v1 = vld [vmem:[#allocation11 + $0x154] ss:$12 sps:$4 sm:$0xff]   ;;  %v1576_v2 = vld [vmem:[#allocation11 + $0x150] ss:$12 sps:$4 sm:$0xff]   ;;  %v1579_v3 = vld [vmem:[#allocation11 + $0x158] ss:$12 sps:$4 sm:$0xff]  }
  0x92   :  { %v1582_v4 = vld [vmem:[#allocation11 + $0x16c] ss:$12 sps:$4 sm:$0xff]   ;;  %v1580_v5 = vld [vmem:[#allocation11 + $0x168] ss:$12 sps:$4 sm:$0xff]   ;;  %v1583_v6 = vld [vmem:[#allocation11 + $0x170] ss:$12 sps:$4 sm:$0xff]  }
  0x93   :  { %1414 = vmatpush3.bf16.msra.mxu0 %v1531_v20  ;;  %vm202_vm2 = vcmp.ne.s32.totalorder %v1971_v8, 0  ;;  %vm461_vm3 = vcmp.lt.s32.totalorder %v1971_v8, 1  ;;  %vm466_vm4 = vcmp.lt.s32.totalorder %v1971_v8, 7  ;;  %vm207_vm5 = vcmp.ne.s32.totalorder %v1974_v10, 8 }
  0x94   :  { %1415 = vmatprep.subr.bf16.mxu0 %v1796_v9  ;;  %384 = vmatpush1.bf16.msra.mxu1 %v1538_v22  ;;  %vm204_vm6 = vcmp.ne.s32.totalorder %v1971_v8, 7  ;;  %vm211_vm7 = vcmp.ne.s32.totalorder %v1974_v10, 15  ;;  %vm1220_vm10 = vmxor %vm202_vm2, %vm1799_vm9  ;;  %vm1236_vm12 = vcmask 15360  }
  0x95   :  { %385 = vmatprep.subr.bf16.mxu1 %v1540_v23  ;;  %vm1228_vm11 = vmxor %vm204_vm6, %vm1799_vm9 }
  0x96   :  { %vm1221_vm13 = vmxor %vm207_vm5, %vm1799_vm9 }
  0x97   :  { %1416 = vmatpush3.bf16.msra.mxu0 %v1535_v24  ;;  %vm1229_vm14 = vmxor %vm211_vm7, %vm1799_vm9 }
  0x98   :  { %1417 = vmatprep.subr.bf16.mxu0 %v1796_v9  ;;  %386 = vmatpush1.bf16.msra.mxu1 %v1542_v25 }
  0x99   :  { %387 = vmatprep.subr.bf16.mxu1 %v1544_v28 }
  0x9b   :  { %1418 = vmatpush3.bf16.msra.mxu0 %v1539_v26 }
  0x9c   :  { %1419 = vmatprep.subr.bf16.mxu0 %v1796_v9  ;;  %388 = vmatpush1.bf16.msra.mxu1 %v1546_v29 }
  0x9d   :  { %389 = vmatprep.subr.bf16.mxu1 %v1548_v31 }
  0x9f   :  { %1420 = vmatpush3.bf16.msra.mxu0 %v1543_v27 }
  0xa0   :  { %1421 = vmatprep.subr.bf16.mxu0 %v1796_v9  ;;  %390 = vmatpush1.bf16.msra.mxu1 %v1550_v32 }
  0xa1   :  { %677 = vmatprep.subr.bf16.mxu1 %v1554_v47 }
  0xa3   :  { %1422 = vmatpush3.bf16.msra.mxu0 %v1547_v30 }
  0xa4   :  { %1423 = vmatprep.subr.bf16.mxu0 %v1796_v9 }
  0xa7   :  { %1424 = vmatpush3.bf16.msra.mxu0 %v1551_v33  ;;  %v1294_v33 = vld [vmem:[%s2093_s6] ss:$0 sm:$0xff] }
  0xa8   :  { %1429 = vmatprep.subr.bf16.mxu0 %v1796_v9 }
 0x15d   :  { %v186_v36 = vpop.f32.mrb[0].mxu0 }
 0x15e   :  { %v187_v37 = vadd.f32 %v1266_v35, %v186_v36  ;;  %v1407_v38 = vpop.f32.mrb[1].mxu0 }
 0x15f   :  { %v189_v40 = vpop.f32.mrb[2].mxu0 }
 0x160   :  { %v190_v42 = vadd.f32 %v1266_v35, %v189_v40  ;;  %v1408_v43 = vpop.f32.mrb[3].mxu0  ;;  %v195_v44 = vadd.f32 %v193_v39, %v187_v37  ;;  %v1295_v37 = vld [vmem:[%s2094_s7] ss:$0 sm:$0xff] }
 0x162   :  { %v196_v45 = vadd.f32 %v194_v41, %v190_v42 }
 0x164   :  { %v197_v46 = vpack.c.bf16 %v196_v45, %v195_v44 }
 0x166   :  { %408 = vmatmul.mubr.bf16.vlgmr.msra.gmra.mrb[0].mxu1 %v197_v46  ;;  %1426 = vmatmul.mubr.bf16.vlgmr.msra.gmra.mrb[4].mxu0 %v197_v46 }
 0x167   :  { %709 = vmatprep.mubr.bf16.mxu1 %v1798_v34  ;;  %1445 = vmatprep.mubr.msk.bf16.mxu0 %vm1797_vm0, %v1796_v9 }
 0x168   :  { %678 = vmatpush1.bf16.msra.mxu1 %v1552_v48  ;;  %1430 = vmatpush3.bf16.msra.mxu0 %v1555_v49 }
 0x169   :  { %1431 = vmatprep.subr.bf16.mxu0 %v1796_v9  ;;  %679 = vmatprep.subr.bf16.mxu1 %v1558_v50 }
 0x16c   :  { %680 = vmatpush1.bf16.msra.mxu1 %v1556_v51  ;;  %1432 = vmatpush3.bf16.msra.mxu0 %v1559_v52 }
 0x16d   :  { %1433 = vmatprep.subr.bf16.mxu0 %v1796_v9  ;;  %681 = vmatprep.subr.bf16.mxu1 %v1562_v53  ;;  %v1586_v53 = vld [vmem:[#allocation11 + $0x184] ss:$12 sps:$4 sm:$0xff]  }
 0x170   :  { %682 = vmatpush1.bf16.msra.mxu1 %v1560_v54  ;;  %1434 = vmatpush3.bf16.msra.mxu0 %v1563_v55  ;;  %v1584_v54 = vld [vmem:[#allocation11 + $0x180] ss:$12 sps:$4 sm:$0xff]   ;;  %v1587_v55 = vld [vmem:[#allocation11 + $0x188] ss:$12 sps:$4 sm:$0xff]  }
 0x171   :  { %1435 = vmatprep.subr.bf16.mxu0 %v1796_v9  ;;  %683 = vmatprep.subr.bf16.mxu1 %v1566_v56  ;;  %v1590_v56 = vld [vmem:[#allocation11 + $0x19c] ss:$12 sps:$4 sm:$0xff]  }
 0x174   :  { %684 = vmatpush1.bf16.msra.mxu1 %v1564_v57  ;;  %1436 = vmatpush3.bf16.msra.mxu0 %v1567_v58  ;;  %v1588_v57 = vld [vmem:[#allocation11 + $0x198] ss:$12 sps:$4 sm:$0xff]   ;;  %v1591_v58 = vld [vmem:[#allocation11 + $0x1a0] ss:$12 sps:$4 sm:$0xff]  }
 0x175   :  { %1437 = vmatprep.subr.bf16.mxu0 %v1796_v9  ;;  %685 = vmatprep.subr.bf16.mxu1 %v1570_v59  ;;  %v1594_v59 = vld [vmem:[#allocation11 + $0x1b4] ss:$12 sps:$4 sm:$0xff]  }
 0x178   :  { %686 = vmatpush1.bf16.msra.mxu1 %v1568_v60  ;;  %1438 = vmatpush3.bf16.msra.mxu0 %v1571_v61  ;;  %v1595_v60 = vld [vmem:[#allocation11 + $0x1b8] ss:$12 sps:$4 sm:$0xff]  }
 0x179   :  { %687 = vmatprep.subr.bf16.mxu1 %v1574_v62  ;;  %1439 = vmatprep.subr.bf16.mxu0 %v1796_v9  ;;  %v1598_v61 = vld [vmem:[#allocation11 + $0x1cc] ss:$12 sps:$4 sm:$0xff]   ;;  %v1596_v62 = vld [vmem:[#allocation11 + $0x1c8] ss:$12 sps:$4 sm:$0xff]  }
 0x17c   :  { %688 = vmatpush1.bf16.msra.mxu1 %v1572_v63  ;;  %1440 = vmatpush3.bf16.msra.mxu0 %v1575_v0  ;;  %v1599_v63 = vld [vmem:[#allocation11 + $0x1d0] ss:$12 sps:$4 sm:$0xff]  }
 0x17d   :  { %689 = vmatprep.subr.bf16.mxu1 %v1578_v1  ;;  %1441 = vmatprep.subr.bf16.mxu0 %v1796_v9  ;;  %v1602_v0 = vld [vmem:[#allocation11 + $0x1e4] ss:$12 sps:$4 sm:$0xff]   ;;  %v1600_v1 = vld [vmem:[#allocation11 + $0x1e0] ss:$12 sps:$4 sm:$0xff]  }
 0x180   :  { %690 = vmatpush1.bf16.msra.mxu1 %v1576_v2  ;;  %1442 = vmatpush3.bf16.msra.mxu0 %v1579_v3  ;;  %v1603_v2 = vld [vmem:[#allocation11 + $0x1e8] ss:$12 sps:$4 sm:$0xff]  }
 0x181   :  { %691 = vmatprep.subr.bf16.mxu1 %v1582_v4  ;;  %1443 = vmatprep.subr.bf16.mxu0 %v1796_v9  ;;  %v1606_v3 = vld [vmem:[#allocation11 + $0x1fc] ss:$12 sps:$4 sm:$0xff]   ;;  %v1604_v4 = vld [vmem:[#allocation11 + $0x1f8] ss:$12 sps:$4 sm:$0xff]  }
 0x184   :  { %692 = vmatpush1.bf16.msra.mxu1 %v1580_v5  ;;  %1444 = vmatpush3.bf16.msra.mxu0 %v1583_v6  ;;  %v1607_v5 = vld [vmem:[#allocation11 + $0x200] ss:$12 sps:$4 sm:$0xff]  }
 0x185   :  { %1449 = vmatprep.subr.bf16.mxu0 %v1796_v9  ;;  %971 = vmatprep.subr.bf16.mxu1 %v1586_v53  ;;  %v1610_v6 = vld [vmem:[#allocation11 + $0x214] ss:$12 sps:$4 sm:$0xff]  }
 0x239   :  { %v409_v11 = vpop.f32.mrb[0].mxu1  ;;  %v452_v12 = vpop.f32.mrb[4].mxu0 }
 0x23a   :  { %v411_v13 = vpop.f32.mrb[1].mxu1  ;;  %v1427_v14 = vpop.f32.mrb[5].mxu0  ;;  %v459_v17 = vrot.slane %v409_v11, 7  ;;  %v464_v18 = vrot.slane %v452_v12, 1  ;;  %v1608_v11 = vld [vmem:[#allocation11 + $0x210] ss:$12 sps:$4 sm:$0xff]  }
 0x23b   :  { %v413_v15 = vpop.f32.mrb[2].mxu1  ;;  %v455_v16 = vpop.f32.mrb[6].mxu0  ;;  %v1611_v12 = vld [vmem:[#allocation11 + $0x218] ss:$12 sps:$4 sm:$0xff]   ;;  %v1612_v14 = vld [vmem:[#allocation11 + $0x228] ss:$12 sps:$4 sm:$0xff]  }
 0x23c   :  { %v460_v19 = vrot.slane %v413_v15, 7  ;;  %v465_v20 = vrot.slane %v455_v16, 1  ;;  %v415_v21 = vpop.f32.mrb[3].mxu1  ;;  %v1428_v22 = vpop.f32.mrb[7].mxu0  ;;  %v1615_v15 = vld [vmem:[#allocation11 + $0x230] ss:$12 sps:$4 sm:$0xff]  }
 0x23e   :  { %v463_v23 = vsel %vm461_vm3, %v460_v19, %v459_v17  ;;  %v467_v24 = vsel %vm466_vm4, %v464_v18, %v465_v20  ;;  %v462_v25 = vsel %vm461_vm3, %v459_v17, %v460_v19  ;;  %v468_v26 = vsel %vm466_vm4, %v465_v20, %v464_v18 }
 0x23f   :  { %v473_v27 = vsel %vm202_vm2, %v463_v23, 0.0  ;;  %v474_v28 = vsel %vm207_vm5, %v462_v25, 0.0  ;;  %v481_v31 = vsel %vm204_vm6, %v467_v24, 0.0  ;;  %v482_v32 = vsel %vm211_vm7, %v468_v26, 0.0 }
 0x240   :  { %v475_v29 = vadd.f32 %v473_v27, %v411_v13  ;;  %v476_v30 = vadd.f32 %v474_v28, %v415_v21  ;;  %v1614_v13 = vld [vmem:[#allocation11 + $0x22c] ss:$12 sps:$4 sm:$0xff]  }
 0x242   :  { %v483_v35 = vadd.f32 %v481_v31, %v475_v29  ;;  %v484_v36 = vadd.f32 %v482_v32, %v476_v30 }
 0x244   :  { %v492_v38 = vmul.f32 %v1294_v33, %v483_v35  ;;  %v493_v39 = vmul.f32 %v1294_v33, %v484_v36 }
 0x246   :  { %v501_v40 = vadd.f32 %v1295_v37, %v492_v38  ;;  %v502_v41 = vadd.f32 %v1295_v37, %v493_v39  ;;  %v1321_v39 = vld [vmem:[%s2093_s6 + $0x1] ss:$0 sm:$0xff] }
 0x248   :  { %v505_v42 = vmul.f32 0.70710677, %v501_v40  ;;  %v506_v43 = vmul.f32 0.70710677, %v502_v41  ;;  %v503_v46 = vmul.f32 0.5, %v501_v40  ;;  %v504_v48 = vmul.f32 0.5, %v502_v41 }
 0x24a   :  { %1624 = verf.f32 %v505_v42  ;;  %v1323_v42 = vld [vmem:[%s2094_s7 + $0x1] ss:$0 sm:$0xff] }
 0x24b   :  { %1626 = verf.f32 %v506_v43 }
 0x254   :  { %v1625_v44 = vpop.eup %1624 }
 0x255   :  { %v1627_v45 = vpop.eup %1626  ;;  %v509_v47 = vadd.f32 1.0, %v1625_v44 }
 0x256   :  { %v510_v49 = vadd.f32 1.0, %v1627_v45 }
 0x257   :  { %v511_v50 = vmul.f32 %v509_v47, %v503_v46 }
 0x258   :  { %v512_v51 = vmul.f32 %v510_v49, %v504_v48 }
 0x25a   :  { %v513_v52 = vpack.c.bf16 %v512_v51, %v511_v50 }
 0x25c   :  { %710 = vmatmul.mubr.bf16.vlgmr.msra.gmra.mrb[4].mxu1 %v513_v52  ;;  %1446 = vmatmul.mubr.bf16.vlgmr.msra.gmra.mrb[8].mxu0 %v513_v52 }
 0x25d   :  { %1003 = vmatprep.mubr.bf16.mxu1 %v1798_v34  ;;  %1465 = vmatprep.mubr.msk.bf16.mxu0 %vm1797_vm0, %v1796_v9  ;;  %v1592_v34 = vld [vmem:[#allocation11 + $0x1b0] ss:$12 sps:$4 sm:$0xff]  }
 0x25e   :  { %972 = vmatpush1.bf16.msra.mxu1 %v1584_v54  ;;  %1450 = vmatpush3.bf16.msra.mxu0 %v1587_v55 }
 0x25f   :  { %1451 = vmatprep.subr.bf16.mxu0 %v1796_v9  ;;  %973 = vmatprep.subr.bf16.mxu1 %v1590_v56 }
 0x262   :  { %974 = vmatpush1.bf16.msra.mxu1 %v1588_v57  ;;  %1452 = vmatpush3.bf16.msra.mxu0 %v1591_v58  ;;  %v1616_v58 = vld [vmem:[#allocation12] sm:$0xff]  }
 0x263   :  { %1453 = vmatprep.subr.bf16.mxu0 %v1796_v9  ;;  %975 = vmatprep.subr.bf16.mxu1 %v1594_v59  ;;  %v1617_v59 = vld [vmem:[#allocation12 + $0x8] sm:$0xff]  }
 0x266   :  { %976 = vmatpush1.bf16.msra.mxu1 %v1592_v34  ;;  %1454 = vmatpush3.bf16.msra.mxu0 %v1595_v60  ;;  %v1618_v34 = vld [vmem:[#allocation12 + $0x10] sm:$0xff]   ;;  %v1619_v60 = vld [vmem:[#allocation12 + $0x18] sm:$0xff]  }
 0x267   :  { %1455 = vmatprep.subr.bf16.mxu0 %v1796_v9  ;;  %977 = vmatprep.subr.bf16.mxu1 %v1598_v61  ;;  %v1620_v61 = vld [vmem:[#allocation12 + $0x20] sm:$0xff]  }
 0x26a   :  { %978 = vmatpush1.bf16.msra.mxu1 %v1596_v62  ;;  %1456 = vmatpush3.bf16.msra.mxu0 %v1599_v63  ;;  %v1621_v62 = vld [vmem:[#allocation12 + $0x28] sm:$0xff]   ;;  %v1622_v63 = vld [vmem:[#allocation12 + $0x30] sm:$0xff]  }
 0x26b   :  { %1457 = vmatprep.subr.bf16.mxu0 %v1796_v9  ;;  %979 = vmatprep.subr.bf16.mxu1 %v1602_v0  ;;  %v1623_v0 = vld [vmem:[#allocation12 + $0x38] sm:$0xff]  }
 0x26e   :  { %980 = vmatpush1.bf16.msra.mxu1 %v1600_v1  ;;  %1458 = vmatpush3.bf16.msra.mxu0 %v1603_v2 }
 0x26f   :  { %981 = vmatprep.subr.bf16.mxu1 %v1606_v3  ;;  %1459 = vmatprep.subr.bf16.mxu0 %v1796_v9 }
 0x272   :  { %982 = vmatpush1.bf16.msra.mxu1 %v1604_v4  ;;  %1460 = vmatpush3.bf16.msra.mxu0 %v1607_v5 }
 0x273   :  { %983 = vmatprep.subr.bf16.mxu1 %v1610_v6  ;;  %1461 = vmatprep.subr.bf16.mxu0 %v1796_v9 }
 0x276   :  { %984 = vmatpush1.bf16.msra.mxu1 %v1608_v11  ;;  %1462 = vmatpush3.bf16.msra.mxu0 %v1611_v12 }
 0x277   :  { %985 = vmatprep.subr.bf16.mxu1 %v1614_v13  ;;  %1463 = vmatprep.subr.bf16.mxu0 %v1796_v9 }
 0x27a   :  { %986 = vmatpush1.bf16.msra.mxu1 %v1612_v14  ;;  %1464 = vmatpush3.bf16.msra.mxu0 %v1615_v15 }
 0x27b   :  { %1469 = vmatprep.subr.bf16.mxu1 %v1796_v9 }
 0x32f   :  { %v711_v16 = vpop.f32.mrb[4].mxu1  ;;  %v754_v17 = vpop.f32.mrb[8].mxu0 }
 0x330   :  { %v713_v18 = vpop.f32.mrb[5].mxu1  ;;  %v1447_v19 = vpop.f32.mrb[9].mxu0  ;;  %v761_v22 = vrot.slane %v711_v16, 7  ;;  %v765_v23 = vrot.slane %v754_v17, 1 }
 0x331   :  { %v715_v20 = vpop.f32.mrb[6].mxu1  ;;  %v757_v21 = vpop.f32.mrb[10].mxu0 }
 0x332   :  { %v762_v24 = vrot.slane %v715_v20, 7  ;;  %v766_v25 = vrot.slane %v757_v21, 1  ;;  %v717_v26 = vpop.f32.mrb[7].mxu1  ;;  %v1448_v27 = vpop.f32.mrb[11].mxu0 }
 0x333   :  { %v1349_v27 = vld [vmem:[%s2093_s6 + $0x2] ss:$0 sm:$0xff] }
 0x334   :  { %v764_v28 = vsel %vm461_vm3, %v762_v24, %v761_v22  ;;  %v767_v29 = vsel %vm466_vm4, %v765_v23, %v766_v25  ;;  %v763_v30 = vsel %vm461_vm3, %v761_v22, %v762_v24  ;;  %v768_v31 = vsel %vm466_vm4, %v766_v25, %v765_v23 }
 0x335   :  { %v769_v32 = vsel %vm202_vm2, %v764_v28, 0.0  ;;  %v770_v33 = vsel %vm207_vm5, %v763_v30, 0.0  ;;  %v773_v37 = vsel %vm204_vm6, %v767_v29, 0.0  ;;  %v774_v38 = vsel %vm211_vm7, %v768_v31, 0.0  ;;  %v1351_v30 = vld [vmem:[%s2094_s7 + $0x2] ss:$0 sm:$0xff] }
 0x336   :  { %v771_v35 = vadd.f32 %v769_v32, %v713_v18  ;;  %v772_v36 = vadd.f32 %v770_v33, %v717_v26 }
 0x338   :  { %v775_v40 = vadd.f32 %v773_v37, %v771_v35  ;;  %v776_v41 = vadd.f32 %v774_v38, %v772_v36 }
 0x33a   :  { %v785_v43 = vmul.f32 %v1321_v39, %v775_v40  ;;  %v786_v44 = vmul.f32 %v1321_v39, %v776_v41 }
 0x33c   :  { %v795_v45 = vadd.f32 %v1323_v42, %v785_v43  ;;  %v796_v46 = vadd.f32 %v1323_v42, %v786_v44 }
 0x33e   :  { %v799_v47 = vmul.f32 0.70710677, %v795_v45  ;;  %v800_v48 = vmul.f32 0.70710677, %v796_v46  ;;  %v797_v51 = vmul.f32 0.5, %v795_v45  ;;  %v798_v53 = vmul.f32 0.5, %v796_v46 }
 0x340   :  { %1628 = verf.f32 %v799_v47  ;;  %v1217_v47 = vand.u32 127, %v199_v7 }
 0x341   :  { %1630 = verf.f32 %v800_v48  ;;  %v1352_v48 = vld [vmem:[%s2096_s9] ss:$0 sm:$0xff] }
 0x342   :  { %vm1218_vm8 = vcmp.eq.s32.totalorder %v1217_v47, 0 }
 0x34a   :  { %v1629_v49 = vpop.eup %1628 }
 0x34b   :  { %v1631_v50 = vpop.eup %1630  ;;  %v803_v52 = vadd.f32 1.0, %v1629_v49 }
 0x34c   :  { %v804_v54 = vadd.f32 1.0, %v1631_v50 }
 0x34d   :  { %v805_v55 = vmul.f32 %v803_v52, %v797_v51  ;;  %v1219_v51 = vsel %vm1218_vm8, 600.0, %v1796_v9 }
 0x34e   :  { %v806_v56 = vmul.f32 %v804_v54, %v798_v53 }
 0x350   :  { %v807_v57 = vpack.c.bf16 %v806_v56, %v805_v55 }
 0x352   :  { %1004 = vmatmul.mubr.bf16.vlgmr.msra.gmra.mrb[8].mxu1 %v807_v57  ;;  %1466 = vmatmul.mubr.bf16.vlgmr.msra.gmra.mrb[12].mxu0 %v807_v57 }
 0x353   :  { %1485 = vmatprep.mubr.msk.bf16.mxu1 %vm1797_vm0, %v1796_v9  ;;  %1470 = vmatpush3.bf16.msra.mxu1 %v1616_v58 }
 0x354   :  { %1471 = vmatprep.subr.bf16.mxu1 %v1796_v9 }
 0x357   :  { %1472 = vmatpush3.bf16.msra.mxu1 %v1617_v59 }
 0x358   :  { %1473 = vmatprep.subr.bf16.mxu1 %v1796_v9 }
 0x35b   :  { %1474 = vmatpush3.bf16.msra.mxu1 %v1618_v34 }
 0x35c   :  { %1475 = vmatprep.subr.bf16.mxu1 %v1796_v9 }
 0x35f   :  { %1476 = vmatpush3.bf16.msra.mxu1 %v1619_v60 }
 0x360   :  { %1477 = vmatprep.subr.bf16.mxu1 %v1796_v9 }
 0x363   :  { %1478 = vmatpush3.bf16.msra.mxu1 %v1620_v61 }
 0x364   :  { %1479 = vmatprep.subr.bf16.mxu1 %v1796_v9 }
 0x367   :  { %1480 = vmatpush3.bf16.msra.mxu1 %v1621_v62 }
 0x368   :  { %1481 = vmatprep.subr.bf16.mxu1 %v1796_v9 }
 0x36b   :  { %1482 = vmatpush3.bf16.msra.mxu1 %v1622_v63 }
 0x36c   :  { %1483 = vmatprep.subr.bf16.mxu1 %v1796_v9 }
 0x36f   :  { %1484 = vmatpush3.bf16.msra.mxu1 %v1623_v0 }
 0x425   :  { %v1005_v1 = vpop.f32.mrb[8].mxu1  ;;  %v1048_v2 = vpop.f32.mrb[12].mxu0 }
 0x426   :  { %v1007_v3 = vpop.f32.mrb[9].mxu1  ;;  %v1467_v4 = vpop.f32.mrb[13].mxu0  ;;  %v1055_v11 = vrot.slane %v1005_v1, 7  ;;  %v1059_v12 = vrot.slane %v1048_v2, 1 }
 0x427   :  { %v1009_v5 = vpop.f32.mrb[10].mxu1  ;;  %v1051_v6 = vpop.f32.mrb[14].mxu0 }
 0x428   :  { %v1056_v13 = vrot.slane %v1009_v5, 7  ;;  %v1060_v14 = vrot.slane %v1051_v6, 1  ;;  %v1011_v15 = vpop.f32.mrb[11].mxu1  ;;  %v1468_v16 = vpop.f32.mrb[15].mxu0 }
 0x42a   :  { %v1058_v17 = vsel %vm461_vm3, %v1056_v13, %v1055_v11  ;;  %v1061_v18 = vsel %vm466_vm4, %v1059_v12, %v1060_v14  ;;  %v1057_v19 = vsel %vm461_vm3, %v1055_v11, %v1056_v13  ;;  %v1062_v20 = vsel %vm466_vm4, %v1060_v14, %v1059_v12 }
 0x42b   :  { %v1063_v21 = vsel %vm202_vm2, %v1058_v17, 0.0  ;;  %v1064_v22 = vsel %vm207_vm5, %v1057_v19, 0.0  ;;  %v1067_v25 = vsel %vm204_vm6, %v1061_v18, 0.0  ;;  %v1068_v26 = vsel %vm211_vm7, %v1062_v20, 0.0 }
 0x42c   :  { %v1065_v23 = vadd.f32 %v1063_v21, %v1007_v3  ;;  %v1066_v24 = vadd.f32 %v1064_v22, %v1011_v15 }
 0x42e   :  { %v1069_v28 = vadd.f32 %v1067_v25, %v1065_v23  ;;  %v1070_v29 = vadd.f32 %v1068_v26, %v1066_v24 }
 0x430   :  { %v1079_v31 = vmul.f32 %v1349_v27, %v1069_v28  ;;  %v1080_v32 = vmul.f32 %v1349_v27, %v1070_v29 }
 0x432   :  { %v1089_v33 = vadd.f32 %v1351_v30, %v1079_v31  ;;  %v1090_v35 = vadd.f32 %v1351_v30, %v1080_v32 }
 0x434   :  { %v1093_v36 = vmul.f32 0.70710677, %v1089_v33  ;;  %v1094_v37 = vmul.f32 0.70710677, %v1090_v35  ;;  %v1091_v40 = vmul.f32 0.5, %v1089_v33  ;;  %v1092_v42 = vmul.f32 0.5, %v1090_v35 }
 0x436   :  { %1632 = verf.f32 %v1093_v36 }
 0x437   :  { %1634 = verf.f32 %v1094_v37 }
 0x440   :  { %v1633_v38 = vpop.eup %1632 }
 0x441   :  { %v1635_v39 = vpop.eup %1634  ;;  %v1097_v41 = vadd.f32 1.0, %v1633_v38 }
 0x442   :  { %v1098_v43 = vadd.f32 1.0, %v1635_v39 }
 0x443   :  { %v1099_v44 = vmul.f32 %v1097_v41, %v1091_v40 }
 0x444   :  { %v1100_v45 = vmul.f32 %v1098_v43, %v1092_v42 }
 0x446   :  { %v1101_v46 = vpack.c.bf16 %v1100_v45, %v1099_v44 }
 0x448   :  { %1486 = vmatmul.mubr.bf16.vlgmr.msra.gmra.mrb[12].mxu1 %v1101_v46 }
 0x51b   :  { %v1209_v49 = vpop.f32.mrb[12].mxu1 }
 0x51c   :  { %v1210_v50 = vadd.f32 %v1352_v48, %v1209_v49  ;;  %v1487_v52 = vpop.f32.mrb[13].mxu1 }
 0x51d   :  { %v1212_v53 = vpop.f32.mrb[14].mxu1 }
 0x51e   :  { %v1226_v7 = vsel %vm1220_vm10, 0.0, %v1210_v50  ;;  %v1213_v54 = vadd.f32 %v1352_v48, %v1212_v53  ;;  %v1488_v55 = vpop.f32.mrb[15].mxu1 }
 0x51f   :  { %v1234_v56 = vsel %vm1228_vm11, %v1219_v51, %v1226_v7 }
 0x520   :  { %1237 = vst.msk [vmem:[%s2097_s10] sm:$0xff] %vm1236_vm12, %v1234_v56  ;;  %v1227_v9 = vsel %vm1221_vm13, 0.0, %v1213_v54 }
 0x521   :  { %v1235_v8 = vsel %vm1229_vm14, %v1219_v51, %v1227_v9 }
 0x522   :  { %1238 = vst.msk [vmem:[%s2097_s10 + $0x8] sm:$0xff] %vm1236_vm12, %v1235_v8 }
 0x523   :  { %1243 = vsyncpa [#allocation8], 1 }
 0x524   :  { %1244 = vsyncpa [#allocation10], 1 }
 0x525   :  { %1245 = vsyncpa [#allocation13], 1 }
 0x526   :  { %1246 = vsyncmov [#allocation4] }
 0x529   :  { %s1247_s1 = vpop.sfrf %1246 }
 0x52a   :  { %p1361_p7 = scmp.ne.s32.totalorder %s1247_s1, 0 }
 0x52c   :  { %1251 = shalt.err (%p1361_p7)  }

</bundles_post_ra>
